<compile_context>
chip_gen: v6e
topology: v6e:2x2x1
jax: 0.10.0
libtpu: 0.0.40
codegen_flags: <defaults>
</compile_context>

<pallas_src>
import math

import jax
import jax.numpy as jnp
from jax import lax
from jax.experimental import pallas as pl
from jax.experimental.pallas import tpu as pltpu

# ----- module hyper-parameters (defaults of BNResFormer.__init__) ------------
EMBED_DIM = 12
DEPTH = 8
NUM_HEADS = 4
HEAD_DIM = EMBED_DIM // NUM_HEADS            # 3
MLP_HIDDEN = int(EMBED_DIM * 4.0)            # 48
INPUT_MLP_DIMS = (4, 8)
INPUT_DIM = 1                                # before the pos-emb channel is added
OUTPUT_DIM = 1
LN_EPS = 1e-6
ATTN_SCALE = HEAD_DIM ** (-0.5)

# dropout / drop_path rates are all 0.0 -> identity; Attention.get_v (depthwise
# conv, zero-init) is never used in forward, so neither is implemented.

# (in, out) dims of the 6 head/tail Linear layers (3 input-MLP, 3 output-MLP).
HEAD_LAYER_DIMS = (
    (INPUT_DIM + 1, INPUT_MLP_DIMS[0]),
    (INPUT_MLP_DIMS[0], INPUT_MLP_DIMS[1]),
    (INPUT_MLP_DIMS[1], EMBED_DIM),
    (EMBED_DIM, INPUT_MLP_DIMS[1]),
    (INPUT_MLP_DIMS[1], INPUT_MLP_DIMS[0]),
    (INPUT_MLP_DIMS[0], OUTPUT_DIM),
)

# Row offsets inside the packed per-block slabs.
OFF_QKVW, OFF_PROJW, OFF_F1W = 0, 36, 48               # blk_w  (D, 96, C)
BLK_W_ROWS = 96
OFF_LN1W, OFF_LN1B = 0, 12                             # blk_b  (D, 156, 1)
OFF_QKVB, OFF_PROJB = 24, 60
OFF_LN2W, OFF_LN2B = 72, 84
OFF_F1B, OFF_F2B = 96, 144
BLK_B_ROWS = 156

_GELU_C = math.sqrt(2.0 / math.pi)


# ---------------------------- kernel helpers ---------------------------------
def _mm(a, b):
    return jnp.dot(a, b, preferred_element_type=jnp.float32)


def _gelu_tanh(x):
    # TODO(synk): nn.GELU() is the exact erf form; the tanh approximation
    # (<1e-6 deviation for the |x|<~0.3 activations seen here, ~1e-3 worst case)
    # keeps the transcendental on the EUP slot instead of a VALU polynomial.
    return 0.5 * x * (1.0 + jnp.tanh(_GELU_C * (x + 0.044715 * x * x * x)))


def _layernorm_cm(x, w, b):
    """LayerNorm over the channel axis for channel-major (C, L) activations."""
    mu = jnp.mean(x, axis=0, keepdims=True)
    var = jnp.mean((x - mu) ** 2, axis=0, keepdims=True)
    return (x - mu) * lax.rsqrt(var + LN_EPS) * w + b


# ------------------------------- kernel ---------------------------------------
def _make_kernel(tb: int, n: int):
    """Build the kernel for `tb` sequences of length `n` per grid step."""
    L = tb * n
    C = EMBED_DIM

    def kernel(x_ref, head_w_ref, head_b_ref, blk_w_ref, blk_f2w_ref, blk_b_ref,
               out_ref):
        hw = head_w_ref[...]                     # (6, C, C)   head/tail weights
        hb = head_b_ref[...]                     # (8, C, 1)   head/tail biases + final LN

        # ---- channel-major input (2, L): row 0 = values, row 1 = pos channel
        xv = x_ref[0]                                            # (1, L)
        j = lax.broadcasted_iota(jnp.int32, (1, n), 1)           # position in a sequence
        seg = ((j >= n // 4).astype(jnp.float32)
               + (j >= n // 2).astype(jnp.float32)
               + (j >= (3 * n) // 4).astype(jnp.float32))
        pos1 = -1.0 + (2.0 / 3.0) * seg          # == linspace(-1,1,4) repeated N/4 times
        pos = pos1 if tb == 1 else jnp.concatenate([pos1] * tb, axis=1)
        x = jnp.concatenate([xv, pos], axis=0)                   # (2, L)

        def head_layer(z, k, relu):
            fin, fout = HEAD_LAYER_DIMS[k]
            z = _mm(hw[k, :fout, :fin], z) + hb[k, :fout, :]
            return jnp.maximum(z, 0.0) if relu else z

        # ---- input MLP: Linear+ReLU x3 (last_activation=True)
        h = head_layer(x, 0, True)
        h = head_layer(h, 1, True)
        h = head_layer(h, 2, True)                               # (C, L)

        # ---- transformer blocks: fori_loop over stacked depth slabs
        def block_body(d, h):
            wd = blk_w_ref[d]                                    # (96, C)
            f2w = blk_f2w_ref[d]                                 # (C, 48)
            bd = blk_b_ref[d]                                    # (156, 1)

            ln1w = bd[OFF_LN1W:OFF_LN1W + C]
            ln1b = bd[OFF_LN1B:OFF_LN1B + C]
            ln2w = bd[OFF_LN2W:OFF_LN2W + C]
            ln2b = bd[OFF_LN2B:OFF_LN2B + C]
            qkvb = bd[OFF_QKVB:OFF_QKVB + 3 * C]
            projb = bd[OFF_PROJB:OFF_PROJB + C]
            f1b = bd[OFF_F1B:OFF_F1B + MLP_HIDDEN]
            f2b = bd[OFF_F2B:OFF_F2B + C]
            qkvw = wd[OFF_QKVW:OFF_QKVW + 3 * C]
            projw = wd[OFF_PROJW:OFF_PROJW + C]
            f1w = wd[OFF_F1W:OFF_F1W + MLP_HIDDEN]

            # ---- x = x + Attention(LN1(x)) ----
            y = _layernorm_cm(h, ln1w, ln1b)
            qkv = _mm(qkvw, y) + qkvb                            # (3C, L)
            seq_outs = []
            for b in range(tb):                                  # per sequence in the block
                cs = slice(b * n, (b + 1) * n)
                acc = jnp.zeros((C, n), jnp.float32)
                for hh in range(NUM_HEADS):                      # heads = sublane slices
                    r0 = hh * HEAD_DIM
                    qh = qkv[r0:r0 + HEAD_DIM, cs]               # (hd, n)
                    kh = qkv[C + r0:C + r0 + HEAD_DIM, cs]
                    vh = qkv[2 * C + r0:2 * C + r0 + HEAD_DIM, cs]
                    s = lax.dot_general(qh, kh, (((0,), (0,)), ((), ())),
                                        preferred_element_type=jnp.float32)
                    s = s * ATTN_SCALE                           # (n, n): rows=query
                    m = jnp.max(s, axis=-1, keepdims=True)
                    e = jnp.exp(s - m)
                    p = e * pl.reciprocal(jnp.sum(e, axis=-1, keepdims=True),
                                          approx=True)
                    oh = lax.dot_general(vh, p, (((1,), (1,)), ((), ())),
                                         preferred_element_type=jnp.float32)  # (hd, n)
                    # concat-over-heads + proj == sum_h proj[:, head cols] @ oh
                    acc = acc + _mm(projw[:, r0:r0 + HEAD_DIM], oh)
                seq_outs.append(acc)
            attn = seq_outs[0] if tb == 1 else jnp.concatenate(seq_outs, axis=1)
            h = h + attn + projb

            # ---- x = x + Mlp(LN2(x)) ----
            y = _layernorm_cm(h, ln2w, ln2b)
            y = _gelu_tanh(_mm(f1w, y) + f1b)                    # (48, L)
            y = _mm(f2w, y) + f2b                                # (C, L)
            return h + y

        h = lax.fori_loop(0, DEPTH, block_body, h)

        # ---- final LayerNorm + output MLP (Linear+ReLU, Linear+ReLU, Linear)
        h = _layernorm_cm(h, hb[6, :C, :], hb[7, :C, :])
        h = head_layer(h, 3, True)
        h = head_layer(h, 4, True)
        h = head_layer(h, 5, False)                              # (1, L)
        out_ref[0] = h                                           # lane-dense store

    return kernel


# --------------------------- parameter init -----------------------------------
def init_params(key):
    """Deterministic synthetic init mirroring _init_vit_weights (Linear weights
    ~ trunc_normal(std=0.02), biases 0, LayerNorm w=1 b=0), packed into slabs:
      head_w (6, C, C)  : input/output MLP weights, (out, in), zero padded
      head_b (8, C, 1)  : rows 0-5 = those biases, rows 6/7 = final-norm w/b
      blk_w  (D, 96, C) : per block [qkv(36) | proj(12) | fc1(48)], (out, in)
      blk_f2w(D, C, 48) : per block fc2 weight, (out, in)
      blk_b  (D, 156, 1): per block [ln1 w,b | qkv b | proj b | ln2 w,b | fc1 b | fc2 b]
    """
    C, H, D = EMBED_DIM, MLP_HIDDEN, DEPTH
    keys = iter(jax.random.split(key, 6 + 4 * D))

    def tn(shape):
        return 0.02 * jax.random.truncated_normal(next(keys), -2.0, 2.0, shape,
                                                  jnp.float32)

    head_w = jnp.zeros((6, C, C), jnp.float32)
    for k, (fin, fout) in enumerate(HEAD_LAYER_DIMS):
        head_w = head_w.at[k, :fout, :fin].set(tn((fout, fin)))
    head_b = jnp.zeros((8, C, 1), jnp.float32)
    head_b = head_b.at[6, :, 0].set(1.0)                 # final LayerNorm weight

    blk_w = jnp.zeros((D, BLK_W_ROWS, C), jnp.float32)
    blk_f2w = jnp.zeros((D, C, H), jnp.float32)
    blk_b = jnp.zeros((D, BLK_B_ROWS, 1), jnp.float32)
    for d in range(D):
        blk_w = blk_w.at[d, OFF_QKVW:OFF_QKVW + 3 * C].set(tn((3 * C, C)))
        blk_w = blk_w.at[d, OFF_PROJW:OFF_PROJW + C].set(tn((C, C)))
        blk_w = blk_w.at[d, OFF_F1W:OFF_F1W + H].set(tn((H, C)))
        blk_f2w = blk_f2w.at[d].set(tn((C, H)))
        blk_b = blk_b.at[d, OFF_LN1W:OFF_LN1W + C, 0].set(1.0)   # ln1 weight
        blk_b = blk_b.at[d, OFF_LN2W:OFF_LN2W + C, 0].set(1.0)   # ln2 weight
    return head_w, head_b, blk_w, blk_f2w, blk_b


# ------------------------------ wrapper ----------------------------------------
def _pick_tb(batch: int, n: int) -> int:
    """Sequences per grid step: pack the lane axis (tb*n) up to ~512 while
    keeping >=2 grid slices so both v7x TensorCores get work when batch>1."""
    best = 1
    for tb in range(1, batch + 1):
        if batch % tb == 0 and batch // tb >= 2 and tb * n <= 512:
            best = tb
    return best


def bnresformer_forward(x2d, params, tb=None):
    batch, n = x2d.shape
    assert n % 4 == 0, "add_pos_emb requires the sequence length to be divisible by 4"
    head_w, head_b, blk_w, blk_f2w, blk_b = params
    if tb is None:
        tb = _pick_tb(batch, n)
    assert batch % tb == 0
    g = batch // tb
    L = tb * n
    # Lane-dense (1, tb*n) blocks; the positional channel is generated on-chip.
    x = x2d.astype(jnp.float32).reshape(g, 1, L)

    const3 = lambda i: (0, 0, 0)
    out = pl.pallas_call(
        _make_kernel(tb, n),
        out_shape=jax.ShapeDtypeStruct((g, 1, L), jnp.float32),
        grid=(g,),
        in_specs=[
            pl.BlockSpec((1, 1, L), lambda i: (i, 0, 0)),
            pl.BlockSpec(head_w.shape, const3),
            pl.BlockSpec(head_b.shape, const3),
            pl.BlockSpec(blk_w.shape, const3),
            pl.BlockSpec(blk_f2w.shape, const3),
            pl.BlockSpec(blk_b.shape, const3),
        ],
        out_specs=pl.BlockSpec((1, 1, L), lambda i: (i, 0, 0)),
        compiler_params=pltpu.CompilerParams(
            dimension_semantics=("parallel",),
            vmem_limit_bytes=32 * 1024 * 1024,
        ),
    )(x, head_w, head_b, blk_w, blk_f2w, blk_b)
    return out.reshape(batch, n)                                 # flat_output


# ------------------------- pure-JAX reference ----------------------------------
def reference_forward(x2d, params):
    head_w, head_b, blk_w, blk_f2w, blk_b = params
    B, N = x2d.shape
    C = EMBED_DIM

    pos = jnp.repeat(jnp.linspace(-1.0, 1.0, 4, dtype=jnp.float32), N // 4)
    pos = jnp.tile(pos[None, :], (B, 1))
    x = jnp.stack([x2d.astype(jnp.float32), pos], axis=2)        # (B, N, 2)

    def ln(z, w, b):
        mu = z.mean(-1, keepdims=True)
        var = ((z - mu) ** 2).mean(-1, keepdims=True)
        return (z - mu) / jnp.sqrt(var + LN_EPS) * w + b

    def head_layer(z, k, relu):
        fin, fout = HEAD_LAYER_DIMS[k]
        z = z @ head_w[k, :fout, :fin].T + head_b[k, :fout, 0]
        return jax.nn.relu(z) if relu else z

    h = head_layer(x, 0, True)
    h = head_layer(h, 1, True)
    h = head_layer(h, 2, True)

    for d in range(DEPTH):
        ln1w = blk_b[d, OFF_LN1W:OFF_LN1W + C, 0]
        ln1b = blk_b[d, OFF_LN1B:OFF_LN1B + C, 0]
        ln2w = blk_b[d, OFF_LN2W:OFF_LN2W + C, 0]
        ln2b = blk_b[d, OFF_LN2B:OFF_LN2B + C, 0]
        qkvb = blk_b[d, OFF_QKVB:OFF_QKVB + 3 * C, 0]
        projb = blk_b[d, OFF_PROJB:OFF_PROJB + C, 0]
        f1b = blk_b[d, OFF_F1B:OFF_F1B + MLP_HIDDEN, 0]
        f2b = blk_b[d, OFF_F2B:OFF_F2B + C, 0]
        qkvw = blk_w[d, OFF_QKVW:OFF_QKVW + 3 * C]
        projw = blk_w[d, OFF_PROJW:OFF_PROJW + C]
        f1w = blk_w[d, OFF_F1W:OFF_F1W + MLP_HIDDEN]
        f2w = blk_f2w[d]

        y = ln(h, ln1w, ln1b)
        qkv = (y @ qkvw.T + qkvb).reshape(B, N, 3, NUM_HEADS, HEAD_DIM)
        qkv = qkv.transpose(2, 0, 3, 1, 4)
        q, k, v = qkv[0], qkv[1], qkv[2]
        a = jnp.einsum('bhnd,bhmd->bhnm', q, k) * ATTN_SCALE
        a = jax.nn.softmax(a, axis=-1)
        o = jnp.einsum('bhnm,bhmd->bhnd', a, v).transpose(0, 2, 1, 3).reshape(B, N, C)
        h = h + (o @ projw.T + projb)

        y = ln(h, ln2w, ln2b)
        y = jax.nn.gelu(y @ f1w.T + f1b, approximate=False)
        h = h + (y @ f2w.T + f2b)

    h = ln(h, head_b[6, :C, 0], head_b[7, :C, 0])
    h = head_layer(h, 3, True)
    h = head_layer(h, 4, True)
    h = head_layer(h, 5, False)
    return jnp.squeeze(h, axis=2)


if __name__ == "__main__":
    key = jax.random.PRNGKey(0)
    kx, kp = jax.random.split(key)
    B, N = 2, 8
    x = jax.random.normal(kx, (B, N), jnp.float32)
    params = init_params(kp)

    out = jax.block_until_ready(bnresformer_forward(x, params))
    assert out.shape == (B, N), out.shape

    ref = reference_forward(x, params)
    if not jnp.allclose(out, ref, atol=1e-5, rtol=1e-3):
        raise AssertionError(
            "kernel/reference mismatch, max abs diff = "
            f"{float(jnp.max(jnp.abs(out - ref)))}")
    print("KERNEL_OK")
</pallas_src>

<mosaic_0001>
module attributes {stable_mosaic.version = 11 : i64} {
  func.func @kernel(%arg0: i32, %arg1: memref<1x1x8xf32, #tpu.memory_space<vmem>>, %arg2: memref<6x12x12xf32, #tpu.memory_space<vmem>>, %arg3: memref<8x12x1xf32, #tpu.memory_space<vmem>>, %arg4: memref<8x96x12xf32, #tpu.memory_space<vmem>>, %arg5: memref<8x12x48xf32, #tpu.memory_space<vmem>>, %arg6: memref<8x156x1xf32, #tpu.memory_space<vmem>>, %arg7: memref<1x1x8xf32, #tpu.memory_space<vmem>>) attributes {dimension_semantics = [#tpu.dimension_semantics<parallel>], iteration_bounds = array<i64: 2>, scalar_prefetch = 0 : i64, scratch_operands = 0 : i64, tpu.core_type = #tpu.core_type<tc>, window_params = [{transform_indices = @transform_0, window_bounds = array<i64: 1, 1, 8>}, {pipeline_mode = #tpu.pipeline_mode<synchronous>, transform_indices = @transform_1, window_bounds = array<i64: 6, 12, 12>}, {pipeline_mode = #tpu.pipeline_mode<synchronous>, transform_indices = @transform_2, window_bounds = array<i64: 8, 12, 1>}, {pipeline_mode = #tpu.pipeline_mode<synchronous>, transform_indices = @transform_3, window_bounds = array<i64: 8, 96, 12>}, {pipeline_mode = #tpu.pipeline_mode<synchronous>, transform_indices = @transform_4, window_bounds = array<i64: 8, 12, 48>}, {pipeline_mode = #tpu.pipeline_mode<synchronous>, transform_indices = @transform_5, window_bounds = array<i64: 8, 156, 1>}, {transform_indices = @transform_6, window_bounds = array<i64: 1, 1, 8>}]} {
    %c0 = arith.constant 0 : index
    %c0_0 = arith.constant 0 : index
    %c0_1 = arith.constant 0 : index
    %0 = vector.load %arg2[%c0, %c0_0, %c0_1] : memref<6x12x12xf32, #tpu.memory_space<vmem>>, vector<6x12x12xf32>
    %c0_2 = arith.constant 0 : index
    %c0_3 = arith.constant 0 : index
    %c0_4 = arith.constant 0 : index
    %1 = vector.load %arg3[%c0_2, %c0_3, %c0_4] : memref<8x12x1xf32, #tpu.memory_space<vmem>>, vector<8x12x1xf32>
    %c0_5 = arith.constant 0 : index
    %c0_6 = arith.constant 0 : index
    %c0_7 = arith.constant 0 : index
    %2 = vector.load %arg1[%c0_5, %c0_6, %c0_7] : memref<1x1x8xf32, #tpu.memory_space<vmem>>, vector<1x1x8xf32>
    %3 = vector.shape_cast %2 : vector<1x1x8xf32> to vector<1x8xf32>
    %4 = tpu.iota {dimensions = array<i32: 1>} : vector<1x8xi32>
    %c2_i32 = arith.constant 2 : i32
    %5 = vector.broadcast %c2_i32 : i32 to vector<1x8xi32>
    %6 = arith.cmpi sge, %4, %5 : vector<1x8xi32>
    %7 = arith.extui %6 : vector<1x8xi1> to vector<1x8xi32>
    %8 = arith.sitofp %7 : vector<1x8xi32> to vector<1x8xf32>
    %c4_i32 = arith.constant 4 : i32
    %9 = vector.broadcast %c4_i32 : i32 to vector<1x8xi32>
    %10 = arith.cmpi sge, %4, %9 : vector<1x8xi32>
    %11 = arith.extui %10 : vector<1x8xi1> to vector<1x8xi32>
    %12 = arith.sitofp %11 : vector<1x8xi32> to vector<1x8xf32>
    %13 = arith.addf %8, %12 : vector<1x8xf32>
    %c6_i32 = arith.constant 6 : i32
    %14 = vector.broadcast %c6_i32 : i32 to vector<1x8xi32>
    %15 = arith.cmpi sge, %4, %14 : vector<1x8xi32>
    %16 = arith.extui %15 : vector<1x8xi1> to vector<1x8xi32>
    %17 = arith.sitofp %16 : vector<1x8xi32> to vector<1x8xf32>
    %18 = arith.addf %13, %17 : vector<1x8xf32>
    %cst = arith.constant 0.666666686 : f32
    %19 = vector.broadcast %cst : f32 to vector<1x8xf32>
    %20 = arith.mulf %19, %18 : vector<1x8xf32>
    %cst_8 = arith.constant -1.000000e+00 : f32
    %21 = vector.broadcast %cst_8 : f32 to vector<1x8xf32>
    %22 = arith.addf %21, %20 : vector<1x8xf32>
    %23 = tpu.concatenate %3, %22 in 0 : vector<1x8xf32>, vector<1x8xf32> -> vector<2x8xf32>
    %24 = vector.extract_strided_slice %0 {offsets = [0, 0, 0], sizes = [1, 4, 2], strides = [1, 1, 1]} : vector<6x12x12xf32> to vector<1x4x2xf32>
    %25 = vector.shape_cast %24 : vector<1x4x2xf32> to vector<4x2xf32>
    %cst_9 = arith.constant dense<0.000000e+00> : vector<4x8xf32>
    %26 = tpu.matmul %25, %23, %cst_9 {dimension_numbers = #tpu.dot_dimension_numbers<[1], [0], [0], [1], [0, 0, 1, 1], [], []>} : vector<4x2xf32>, vector<2x8xf32>, vector<4x8xf32> -> vector<4x8xf32>
    %27 = vector.extract_strided_slice %1 {offsets = [0, 0, 0], sizes = [1, 4, 1], strides = [1, 1, 1]} : vector<8x12x1xf32> to vector<1x4x1xf32>
    %28 = vector.shape_cast %27 : vector<1x4x1xf32> to vector<4x1xf32>
    %29 = vector.broadcast %28 : vector<4x1xf32> to vector<4x8xf32>
    %30 = arith.addf %26, %29 : vector<4x8xf32>
    %cst_10 = arith.constant 0.000000e+00 : f32
    %31 = vector.broadcast %cst_10 : f32 to vector<4x8xf32>
    %32 = arith.maximumf %30, %31 : vector<4x8xf32>
    %33 = vector.extract_strided_slice %0 {offsets = [1, 0, 0], sizes = [1, 8, 4], strides = [1, 1, 1]} : vector<6x12x12xf32> to vector<1x8x4xf32>
    %34 = vector.shape_cast %33 : vector<1x8x4xf32> to vector<8x4xf32>
    %cst_11 = arith.constant dense<0.000000e+00> : vector<8x8xf32>
    %35 = tpu.matmul %34, %32, %cst_11 {dimension_numbers = #tpu.dot_dimension_numbers<[1], [0], [0], [1], [0, 0, 1, 1], [], []>} : vector<8x4xf32>, vector<4x8xf32>, vector<8x8xf32> -> vector<8x8xf32>
    %36 = vector.extract_strided_slice %1 {offsets = [1, 0, 0], sizes = [1, 8, 1], strides = [1, 1, 1]} : vector<8x12x1xf32> to vector<1x8x1xf32>
    %37 = vector.shape_cast %36 : vector<1x8x1xf32> to vector<8x1xf32>
    %38 = vector.broadcast %37 : vector<8x1xf32> to vector<8x8xf32>
    %39 = arith.addf %35, %38 : vector<8x8xf32>
    %cst_12 = arith.constant 0.000000e+00 : f32
    %40 = vector.broadcast %cst_12 : f32 to vector<8x8xf32>
    %41 = arith.maximumf %39, %40 : vector<8x8xf32>
    %42 = vector.extract_strided_slice %0 {offsets = [2, 0, 0], sizes = [1, 12, 8], strides = [1, 1, 1]} : vector<6x12x12xf32> to vector<1x12x8xf32>
    %43 = vector.shape_cast %42 : vector<1x12x8xf32> to vector<12x8xf32>
    %cst_13 = arith.constant dense<0.000000e+00> : vector<12x8xf32>
    %44 = tpu.matmul %43, %41, %cst_13 {dimension_numbers = #tpu.dot_dimension_numbers<[1], [0], [0], [1], [0, 0, 1, 1], [], []>} : vector<12x8xf32>, vector<8x8xf32>, vector<12x8xf32> -> vector<12x8xf32>
    %45 = vector.extract_strided_slice %1 {offsets = [2, 0, 0], sizes = [1, 12, 1], strides = [1, 1, 1]} : vector<8x12x1xf32> to vector<1x12x1xf32>
    %46 = vector.shape_cast %45 : vector<1x12x1xf32> to vector<12x1xf32>
    %47 = vector.broadcast %46 : vector<12x1xf32> to vector<12x8xf32>
    %48 = arith.addf %44, %47 : vector<12x8xf32>
    %cst_14 = arith.constant 0.000000e+00 : f32
    %49 = vector.broadcast %cst_14 : f32 to vector<12x8xf32>
    %50 = arith.maximumf %48, %49 : vector<12x8xf32>
    %c0_i32 = arith.constant 0 : i32
    %c8_i32 = arith.constant 8 : i32
    %51 = arith.addi %c0_i32, %c8_i32 : i32
    %c1_i32 = arith.constant 1 : i32
    %52 = scf.for %arg8 = %c0_i32 to %51 step %c1_i32 iter_args(%arg9 = %50) -> (vector<12x8xf32>)  : i32 {
      %107 = arith.index_cast %arg8 : i32 to index
      %c0_29 = arith.constant 0 : index
      %c0_30 = arith.constant 0 : index
      %108 = vector.load %arg4[%107, %c0_29, %c0_30] : memref<8x96x12xf32, #tpu.memory_space<vmem>>, vector<1x96x12xf32>
      %109 = vector.shape_cast %108 : vector<1x96x12xf32> to vector<96x12xf32>
      %110 = arith.index_cast %arg8 : i32 to index
      %c0_31 = arith.constant 0 : index
      %c0_32 = arith.constant 0 : index
      %111 = vector.load %arg5[%110, %c0_31, %c0_32] : memref<8x12x48xf32, #tpu.memory_space<vmem>>, vector<1x12x48xf32>
      %112 = vector.shape_cast %111 : vector<1x12x48xf32> to vector<12x48xf32>
      %113 = arith.index_cast %arg8 : i32 to index
      %c0_33 = arith.constant 0 : index
      %c0_34 = arith.constant 0 : index
      %114 = vector.load %arg6[%113, %c0_33, %c0_34] : memref<8x156x1xf32, #tpu.memory_space<vmem>>, vector<1x156x1xf32>
      %115 = vector.shape_cast %114 : vector<1x156x1xf32> to vector<156x1xf32>
      %116 = vector.extract_strided_slice %115 {offsets = [0, 0], sizes = [12, 1], strides = [1, 1]} : vector<156x1xf32> to vector<12x1xf32>
      %117 = vector.extract_strided_slice %115 {offsets = [12, 0], sizes = [12, 1], strides = [1, 1]} : vector<156x1xf32> to vector<12x1xf32>
      %118 = vector.extract_strided_slice %115 {offsets = [72, 0], sizes = [12, 1], strides = [1, 1]} : vector<156x1xf32> to vector<12x1xf32>
      %119 = vector.extract_strided_slice %115 {offsets = [84, 0], sizes = [12, 1], strides = [1, 1]} : vector<156x1xf32> to vector<12x1xf32>
      %120 = vector.extract_strided_slice %115 {offsets = [24, 0], sizes = [36, 1], strides = [1, 1]} : vector<156x1xf32> to vector<36x1xf32>
      %121 = vector.extract_strided_slice %115 {offsets = [60, 0], sizes = [12, 1], strides = [1, 1]} : vector<156x1xf32> to vector<12x1xf32>
      %122 = vector.extract_strided_slice %115 {offsets = [96, 0], sizes = [48, 1], strides = [1, 1]} : vector<156x1xf32> to vector<48x1xf32>
      %123 = vector.extract_strided_slice %115 {offsets = [144, 0], sizes = [12, 1], strides = [1, 1]} : vector<156x1xf32> to vector<12x1xf32>
      %124 = vector.extract_strided_slice %109 {offsets = [0, 0], sizes = [36, 12], strides = [1, 1]} : vector<96x12xf32> to vector<36x12xf32>
      %125 = vector.extract_strided_slice %109 {offsets = [36, 0], sizes = [12, 12], strides = [1, 1]} : vector<96x12xf32> to vector<12x12xf32>
      %126 = vector.extract_strided_slice %109 {offsets = [48, 0], sizes = [48, 12], strides = [1, 1]} : vector<96x12xf32> to vector<48x12xf32>
      %cst_35 = arith.constant dense<0.000000e+00> : vector<8xf32>
      %127 = vector.multi_reduction <add>, %arg9, %cst_35 [0] : vector<12x8xf32> to vector<8xf32>
      %128 = vector.shape_cast %127 : vector<8xf32> to vector<1x8xf32>
      %cst_36 = arith.constant 1.200000e+01 : f32
      %129 = vector.broadcast %cst_36 : f32 to vector<1x8xf32>
      %130 = arith.divf %128, %129 : vector<1x8xf32>
      %131 = vector.broadcast %130 : vector<1x8xf32> to vector<12x8xf32>
      %132 = arith.subf %arg9, %131 : vector<12x8xf32>
      %133 = arith.mulf %132, %132 : vector<12x8xf32>
      %cst_37 = arith.constant dense<0.000000e+00> : vector<8xf32>
      %134 = vector.multi_reduction <add>, %133, %cst_37 [0] : vector<12x8xf32> to vector<8xf32>
      %135 = vector.shape_cast %134 : vector<8xf32> to vector<1x8xf32>
      %cst_38 = arith.constant 1.200000e+01 : f32
      %136 = vector.broadcast %cst_38 : f32 to vector<1x8xf32>
      %137 = arith.divf %135, %136 : vector<1x8xf32>
      %138 = vector.broadcast %130 : vector<1x8xf32> to vector<12x8xf32>
      %139 = arith.subf %arg9, %138 : vector<12x8xf32>
      %cst_39 = arith.constant 9.99999997E-7 : f32
      %140 = vector.broadcast %cst_39 : f32 to vector<1x8xf32>
      %141 = arith.addf %137, %140 : vector<1x8xf32>
      %142 = math.rsqrt %141 : vector<1x8xf32>
      %143 = vector.broadcast %142 : vector<1x8xf32> to vector<12x8xf32>
      %144 = arith.mulf %139, %143 : vector<12x8xf32>
      %145 = vector.broadcast %116 : vector<12x1xf32> to vector<12x8xf32>
      %146 = arith.mulf %144, %145 : vector<12x8xf32>
      %147 = vector.broadcast %117 : vector<12x1xf32> to vector<12x8xf32>
      %148 = arith.addf %146, %147 : vector<12x8xf32>
      %cst_40 = arith.constant dense<0.000000e+00> : vector<36x8xf32>
      %149 = tpu.matmul %124, %148, %cst_40 {dimension_numbers = #tpu.dot_dimension_numbers<[1], [0], [0], [1], [0, 0, 1, 1], [], []>} : vector<36x12xf32>, vector<12x8xf32>, vector<36x8xf32> -> vector<36x8xf32>
      %150 = vector.broadcast %120 : vector<36x1xf32> to vector<36x8xf32>
      %151 = arith.addf %149, %150 : vector<36x8xf32>
      %cst_41 = arith.constant 0.000000e+00 : f32
      %152 = vector.broadcast %cst_41 : f32 to vector<12x8xf32>
      %153 = vector.extract_strided_slice %151 {offsets = [0, 0], sizes = [3, 8], strides = [1, 1]} : vector<36x8xf32> to vector<3x8xf32>
      %154 = vector.extract_strided_slice %151 {offsets = [12, 0], sizes = [3, 8], strides = [1, 1]} : vector<36x8xf32> to vector<3x8xf32>
      %155 = vector.extract_strided_slice %151 {offsets = [24, 0], sizes = [3, 8], strides = [1, 1]} : vector<36x8xf32> to vector<3x8xf32>
      %cst_42 = arith.constant dense<0.000000e+00> : vector<8x8xf32>
      %156 = tpu.matmul %153, %154, %cst_42 {dimension_numbers = #tpu.dot_dimension_numbers<[0], [0], [1], [1], [0, 1, 1, 1], [], []>} : vector<3x8xf32>, vector<3x8xf32>, vector<8x8xf32> -> vector<8x8xf32>
      %cst_43 = arith.constant 0.577350259 : f32
      %157 = vector.broadcast %cst_43 : f32 to vector<8x8xf32>
      %158 = arith.mulf %156, %157 : vector<8x8xf32>
      %cst_44 = arith.constant dense<0xFF800000> : vector<8xf32>
      %159 = vector.multi_reduction <maximumf>, %158, %cst_44 [1] : vector<8x8xf32> to vector<8xf32>
      %160 = vector.shape_cast %159 : vector<8xf32> to vector<8x1xf32>
      %161 = vector.broadcast %160 : vector<8x1xf32> to vector<8x8xf32>
      %162 = arith.subf %158, %161 : vector<8x8xf32>
      %163 = math.exp %162 : vector<8x8xf32>
      %cst_45 = arith.constant dense<0.000000e+00> : vector<8xf32>
      %164 = vector.multi_reduction <add>, %163, %cst_45 [1] : vector<8x8xf32> to vector<8xf32>
      %165 = vector.shape_cast %164 : vector<8xf32> to vector<8x1xf32>
      %166 = tpu.reciprocal %165 {approx = true} : vector<8x1xf32> -> vector<8x1xf32>
      %167 = vector.broadcast %166 : vector<8x1xf32> to vector<8x8xf32>
      %168 = arith.mulf %163, %167 : vector<8x8xf32>
      %cst_46 = arith.constant dense<0.000000e+00> : vector<3x8xf32>
      %169 = tpu.matmul %155, %168, %cst_46 {dimension_numbers = #tpu.dot_dimension_numbers<[1], [1], [0], [0], [0, 0, 1, 0], [], []>} : vector<3x8xf32>, vector<8x8xf32>, vector<3x8xf32> -> vector<3x8xf32>
      %170 = vector.extract_strided_slice %125 {offsets = [0, 0], sizes = [12, 3], strides = [1, 1]} : vector<12x12xf32> to vector<12x3xf32>
      %cst_47 = arith.constant dense<0.000000e+00> : vector<12x8xf32>
      %171 = tpu.matmul %170, %169, %cst_47 {dimension_numbers = #tpu.dot_dimension_numbers<[1], [0], [0], [1], [0, 0, 1, 1], [], []>} : vector<12x3xf32>, vector<3x8xf32>, vector<12x8xf32> -> vector<12x8xf32>
      %172 = arith.addf %152, %171 : vector<12x8xf32>
      %173 = vector.extract_strided_slice %151 {offsets = [3, 0], sizes = [3, 8], strides = [1, 1]} : vector<36x8xf32> to vector<3x8xf32>
      %174 = vector.extract_strided_slice %151 {offsets = [15, 0], sizes = [3, 8], strides = [1, 1]} : vector<36x8xf32> to vector<3x8xf32>
      %175 = vector.extract_strided_slice %151 {offsets = [27, 0], sizes = [3, 8], strides = [1, 1]} : vector<36x8xf32> to vector<3x8xf32>
      %cst_48 = arith.constant dense<0.000000e+00> : vector<8x8xf32>
      %176 = tpu.matmul %173, %174, %cst_48 {dimension_numbers = #tpu.dot_dimension_numbers<[0], [0], [1], [1], [0, 1, 1, 1], [], []>} : vector<3x8xf32>, vector<3x8xf32>, vector<8x8xf32> -> vector<8x8xf32>
      %cst_49 = arith.constant 0.577350259 : f32
      %177 = vector.broadcast %cst_49 : f32 to vector<8x8xf32>
      %178 = arith.mulf %176, %177 : vector<8x8xf32>
      %cst_50 = arith.constant dense<0xFF800000> : vector<8xf32>
      %179 = vector.multi_reduction <maximumf>, %178, %cst_50 [1] : vector<8x8xf32> to vector<8xf32>
      %180 = vector.shape_cast %179 : vector<8xf32> to vector<8x1xf32>
      %181 = vector.broadcast %180 : vector<8x1xf32> to vector<8x8xf32>
      %182 = arith.subf %178, %181 : vector<8x8xf32>
      %183 = math.exp %182 : vector<8x8xf32>
      %cst_51 = arith.constant dense<0.000000e+00> : vector<8xf32>
      %184 = vector.multi_reduction <add>, %183, %cst_51 [1] : vector<8x8xf32> to vector<8xf32>
      %185 = vector.shape_cast %184 : vector<8xf32> to vector<8x1xf32>
      %186 = tpu.reciprocal %185 {approx = true} : vector<8x1xf32> -> vector<8x1xf32>
      %187 = vector.broadcast %186 : vector<8x1xf32> to vector<8x8xf32>
      %188 = arith.mulf %183, %187 : vector<8x8xf32>
      %cst_52 = arith.constant dense<0.000000e+00> : vector<3x8xf32>
      %189 = tpu.matmul %175, %188, %cst_52 {dimension_numbers = #tpu.dot_dimension_numbers<[1], [1], [0], [0], [0, 0, 1, 0], [], []>} : vector<3x8xf32>, vector<8x8xf32>, vector<3x8xf32> -> vector<3x8xf32>
      %190 = vector.extract_strided_slice %125 {offsets = [0, 3], sizes = [12, 3], strides = [1, 1]} : vector<12x12xf32> to vector<12x3xf32>
      %cst_53 = arith.constant dense<0.000000e+00> : vector<12x8xf32>
      %191 = tpu.matmul %190, %189, %cst_53 {dimension_numbers = #tpu.dot_dimension_numbers<[1], [0], [0], [1], [0, 0, 1, 1], [], []>} : vector<12x3xf32>, vector<3x8xf32>, vector<12x8xf32> -> vector<12x8xf32>
      %192 = arith.addf %172, %191 : vector<12x8xf32>
      %193 = vector.extract_strided_slice %151 {offsets = [6, 0], sizes = [3, 8], strides = [1, 1]} : vector<36x8xf32> to vector<3x8xf32>
      %194 = vector.extract_strided_slice %151 {offsets = [18, 0], sizes = [3, 8], strides = [1, 1]} : vector<36x8xf32> to vector<3x8xf32>
      %195 = vector.extract_strided_slice %151 {offsets = [30, 0], sizes = [3, 8], strides = [1, 1]} : vector<36x8xf32> to vector<3x8xf32>
      %cst_54 = arith.constant dense<0.000000e+00> : vector<8x8xf32>
      %196 = tpu.matmul %193, %194, %cst_54 {dimension_numbers = #tpu.dot_dimension_numbers<[0], [0], [1], [1], [0, 1, 1, 1], [], []>} : vector<3x8xf32>, vector<3x8xf32>, vector<8x8xf32> -> vector<8x8xf32>
      %cst_55 = arith.constant 0.577350259 : f32
      %197 = vector.broadcast %cst_55 : f32 to vector<8x8xf32>
      %198 = arith.mulf %196, %197 : vector<8x8xf32>
      %cst_56 = arith.constant dense<0xFF800000> : vector<8xf32>
      %199 = vector.multi_reduction <maximumf>, %198, %cst_56 [1] : vector<8x8xf32> to vector<8xf32>
      %200 = vector.shape_cast %199 : vector<8xf32> to vector<8x1xf32>
      %201 = vector.broadcast %200 : vector<8x1xf32> to vector<8x8xf32>
      %202 = arith.subf %198, %201 : vector<8x8xf32>
      %203 = math.exp %202 : vector<8x8xf32>
      %cst_57 = arith.constant dense<0.000000e+00> : vector<8xf32>
      %204 = vector.multi_reduction <add>, %203, %cst_57 [1] : vector<8x8xf32> to vector<8xf32>
      %205 = vector.shape_cast %204 : vector<8xf32> to vector<8x1xf32>
      %206 = tpu.reciprocal %205 {approx = true} : vector<8x1xf32> -> vector<8x1xf32>
      %207 = vector.broadcast %206 : vector<8x1xf32> to vector<8x8xf32>
      %208 = arith.mulf %203, %207 : vector<8x8xf32>
      %cst_58 = arith.constant dense<0.000000e+00> : vector<3x8xf32>
      %209 = tpu.matmul %195, %208, %cst_58 {dimension_numbers = #tpu.dot_dimension_numbers<[1], [1], [0], [0], [0, 0, 1, 0], [], []>} : vector<3x8xf32>, vector<8x8xf32>, vector<3x8xf32> -> vector<3x8xf32>
      %210 = vector.extract_strided_slice %125 {offsets = [0, 6], sizes = [12, 3], strides = [1, 1]} : vector<12x12xf32> to vector<12x3xf32>
      %cst_59 = arith.constant dense<0.000000e+00> : vector<12x8xf32>
      %211 = tpu.matmul %210, %209, %cst_59 {dimension_numbers = #tpu.dot_dimension_numbers<[1], [0], [0], [1], [0, 0, 1, 1], [], []>} : vector<12x3xf32>, vector<3x8xf32>, vector<12x8xf32> -> vector<12x8xf32>
      %212 = arith.addf %192, %211 : vector<12x8xf32>
      %213 = vector.extract_strided_slice %151 {offsets = [9, 0], sizes = [3, 8], strides = [1, 1]} : vector<36x8xf32> to vector<3x8xf32>
      %214 = vector.extract_strided_slice %151 {offsets = [21, 0], sizes = [3, 8], strides = [1, 1]} : vector<36x8xf32> to vector<3x8xf32>
      %215 = vector.extract_strided_slice %151 {offsets = [33, 0], sizes = [3, 8], strides = [1, 1]} : vector<36x8xf32> to vector<3x8xf32>
      %cst_60 = arith.constant dense<0.000000e+00> : vector<8x8xf32>
      %216 = tpu.matmul %213, %214, %cst_60 {dimension_numbers = #tpu.dot_dimension_numbers<[0], [0], [1], [1], [0, 1, 1, 1], [], []>} : vector<3x8xf32>, vector<3x8xf32>, vector<8x8xf32> -> vector<8x8xf32>
      %cst_61 = arith.constant 0.577350259 : f32
      %217 = vector.broadcast %cst_61 : f32 to vector<8x8xf32>
      %218 = arith.mulf %216, %217 : vector<8x8xf32>
      %cst_62 = arith.constant dense<0xFF800000> : vector<8xf32>
      %219 = vector.multi_reduction <maximumf>, %218, %cst_62 [1] : vector<8x8xf32> to vector<8xf32>
      %220 = vector.shape_cast %219 : vector<8xf32> to vector<8x1xf32>
      %221 = vector.broadcast %220 : vector<8x1xf32> to vector<8x8xf32>
      %222 = arith.subf %218, %221 : vector<8x8xf32>
      %223 = math.exp %222 : vector<8x8xf32>
      %cst_63 = arith.constant dense<0.000000e+00> : vector<8xf32>
      %224 = vector.multi_reduction <add>, %223, %cst_63 [1] : vector<8x8xf32> to vector<8xf32>
      %225 = vector.shape_cast %224 : vector<8xf32> to vector<8x1xf32>
      %226 = tpu.reciprocal %225 {approx = true} : vector<8x1xf32> -> vector<8x1xf32>
      %227 = vector.broadcast %226 : vector<8x1xf32> to vector<8x8xf32>
      %228 = arith.mulf %223, %227 : vector<8x8xf32>
      %cst_64 = arith.constant dense<0.000000e+00> : vector<3x8xf32>
      %229 = tpu.matmul %215, %228, %cst_64 {dimension_numbers = #tpu.dot_dimension_numbers<[1], [1], [0], [0], [0, 0, 1, 0], [], []>} : vector<3x8xf32>, vector<8x8xf32>, vector<3x8xf32> -> vector<3x8xf32>
      %230 = vector.extract_strided_slice %125 {offsets = [0, 9], sizes = [12, 3], strides = [1, 1]} : vector<12x12xf32> to vector<12x3xf32>
      %cst_65 = arith.constant dense<0.000000e+00> : vector<12x8xf32>
      %231 = tpu.matmul %230, %229, %cst_65 {dimension_numbers = #tpu.dot_dimension_numbers<[1], [0], [0], [1], [0, 0, 1, 1], [], []>} : vector<12x3xf32>, vector<3x8xf32>, vector<12x8xf32> -> vector<12x8xf32>
      %232 = arith.addf %212, %231 : vector<12x8xf32>
      %233 = arith.addf %arg9, %232 : vector<12x8xf32>
      %234 = vector.broadcast %121 : vector<12x1xf32> to vector<12x8xf32>
      %235 = arith.addf %233, %234 : vector<12x8xf32>
      %cst_66 = arith.constant dense<0.000000e+00> : vector<8xf32>
      %236 = vector.multi_reduction <add>, %235, %cst_66 [0] : vector<12x8xf32> to vector<8xf32>
      %237 = vector.shape_cast %236 : vector<8xf32> to vector<1x8xf32>
      %cst_67 = arith.constant 1.200000e+01 : f32
      %238 = vector.broadcast %cst_67 : f32 to vector<1x8xf32>
      %239 = arith.divf %237, %238 : vector<1x8xf32>
      %240 = vector.broadcast %239 : vector<1x8xf32> to vector<12x8xf32>
      %241 = arith.subf %235, %240 : vector<12x8xf32>
      %242 = arith.mulf %241, %241 : vector<12x8xf32>
      %cst_68 = arith.constant dense<0.000000e+00> : vector<8xf32>
      %243 = vector.multi_reduction <add>, %242, %cst_68 [0] : vector<12x8xf32> to vector<8xf32>
      %244 = vector.shape_cast %243 : vector<8xf32> to vector<1x8xf32>
      %cst_69 = arith.constant 1.200000e+01 : f32
      %245 = vector.broadcast %cst_69 : f32 to vector<1x8xf32>
      %246 = arith.divf %244, %245 : vector<1x8xf32>
      %247 = vector.broadcast %239 : vector<1x8xf32> to vector<12x8xf32>
      %248 = arith.subf %235, %247 : vector<12x8xf32>
      %cst_70 = arith.constant 9.99999997E-7 : f32
      %249 = vector.broadcast %cst_70 : f32 to vector<1x8xf32>
      %250 = arith.addf %246, %249 : vector<1x8xf32>
      %251 = math.rsqrt %250 : vector<1x8xf32>
      %252 = vector.broadcast %251 : vector<1x8xf32> to vector<12x8xf32>
      %253 = arith.mulf %248, %252 : vector<12x8xf32>
      %254 = vector.broadcast %118 : vector<12x1xf32> to vector<12x8xf32>
      %255 = arith.mulf %253, %254 : vector<12x8xf32>
      %256 = vector.broadcast %119 : vector<12x1xf32> to vector<12x8xf32>
      %257 = arith.addf %255, %256 : vector<12x8xf32>
      %cst_71 = arith.constant dense<0.000000e+00> : vector<48x8xf32>
      %258 = tpu.matmul %126, %257, %cst_71 {dimension_numbers = #tpu.dot_dimension_numbers<[1], [0], [0], [1], [0, 0, 1, 1], [], []>} : vector<48x12xf32>, vector<12x8xf32>, vector<48x8xf32> -> vector<48x8xf32>
      %259 = vector.broadcast %122 : vector<48x1xf32> to vector<48x8xf32>
      %260 = arith.addf %258, %259 : vector<48x8xf32>
      %cst_72 = arith.constant 5.000000e-01 : f32
      %261 = vector.broadcast %cst_72 : f32 to vector<48x8xf32>
      %262 = arith.mulf %261, %260 : vector<48x8xf32>
      %cst_73 = arith.constant 4.471500e-02 : f32
      %263 = vector.broadcast %cst_73 : f32 to vector<48x8xf32>
      %264 = arith.mulf %263, %260 : vector<48x8xf32>
      %265 = arith.mulf %264, %260 : vector<48x8xf32>
      %266 = arith.mulf %265, %260 : vector<48x8xf32>
      %267 = arith.addf %260, %266 : vector<48x8xf32>
      %cst_74 = arith.constant 0.797884583 : f32
      %268 = vector.broadcast %cst_74 : f32 to vector<48x8xf32>
      %269 = arith.mulf %268, %267 : vector<48x8xf32>
      %270 = math.tanh %269 : vector<48x8xf32>
      %cst_75 = arith.constant 1.000000e+00 : f32
      %271 = vector.broadcast %cst_75 : f32 to vector<48x8xf32>
      %272 = arith.addf %271, %270 : vector<48x8xf32>
      %273 = arith.mulf %262, %272 : vector<48x8xf32>
      %cst_76 = arith.constant dense<0.000000e+00> : vector<12x8xf32>
      %274 = tpu.matmul %112, %273, %cst_76 {dimension_numbers = #tpu.dot_dimension_numbers<[1], [0], [0], [1], [0, 0, 1, 1], [], []>} : vector<12x48xf32>, vector<48x8xf32>, vector<12x8xf32> -> vector<12x8xf32>
      %275 = vector.broadcast %123 : vector<12x1xf32> to vector<12x8xf32>
      %276 = arith.addf %274, %275 : vector<12x8xf32>
      %277 = arith.addf %235, %276 : vector<12x8xf32>
      scf.yield %277 : vector<12x8xf32>
    }
    %c8_i32_15 = arith.constant 8 : i32
    %53 = vector.extract_strided_slice %1 {offsets = [6, 0, 0], sizes = [1, 12, 1], strides = [1, 1, 1]} : vector<8x12x1xf32> to vector<1x12x1xf32>
    %54 = vector.shape_cast %53 : vector<1x12x1xf32> to vector<12x1xf32>
    %55 = vector.extract_strided_slice %1 {offsets = [7, 0, 0], sizes = [1, 12, 1], strides = [1, 1, 1]} : vector<8x12x1xf32> to vector<1x12x1xf32>
    %56 = vector.shape_cast %55 : vector<1x12x1xf32> to vector<12x1xf32>
    %cst_16 = arith.constant dense<0.000000e+00> : vector<8xf32>
    %57 = vector.multi_reduction <add>, %52, %cst_16 [0] : vector<12x8xf32> to vector<8xf32>
    %58 = vector.shape_cast %57 : vector<8xf32> to vector<1x8xf32>
    %cst_17 = arith.constant 1.200000e+01 : f32
    %59 = vector.broadcast %cst_17 : f32 to vector<1x8xf32>
    %60 = arith.divf %58, %59 : vector<1x8xf32>
    %61 = vector.broadcast %60 : vector<1x8xf32> to vector<12x8xf32>
    %62 = arith.subf %52, %61 : vector<12x8xf32>
    %63 = arith.mulf %62, %62 : vector<12x8xf32>
    %cst_18 = arith.constant dense<0.000000e+00> : vector<8xf32>
    %64 = vector.multi_reduction <add>, %63, %cst_18 [0] : vector<12x8xf32> to vector<8xf32>
    %65 = vector.shape_cast %64 : vector<8xf32> to vector<1x8xf32>
    %cst_19 = arith.constant 1.200000e+01 : f32
    %66 = vector.broadcast %cst_19 : f32 to vector<1x8xf32>
    %67 = arith.divf %65, %66 : vector<1x8xf32>
    %68 = vector.broadcast %60 : vector<1x8xf32> to vector<12x8xf32>
    %69 = arith.subf %52, %68 : vector<12x8xf32>
    %cst_20 = arith.constant 9.99999997E-7 : f32
    %70 = vector.broadcast %cst_20 : f32 to vector<1x8xf32>
    %71 = arith.addf %67, %70 : vector<1x8xf32>
    %72 = math.rsqrt %71 : vector<1x8xf32>
    %73 = vector.broadcast %72 : vector<1x8xf32> to vector<12x8xf32>
    %74 = arith.mulf %69, %73 : vector<12x8xf32>
    %75 = vector.broadcast %54 : vector<12x1xf32> to vector<12x8xf32>
    %76 = arith.mulf %74, %75 : vector<12x8xf32>
    %77 = vector.broadcast %56 : vector<12x1xf32> to vector<12x8xf32>
    %78 = arith.addf %76, %77 : vector<12x8xf32>
    %79 = vector.extract_strided_slice %0 {offsets = [3, 0, 0], sizes = [1, 8, 12], strides = [1, 1, 1]} : vector<6x12x12xf32> to vector<1x8x12xf32>
    %80 = vector.shape_cast %79 : vector<1x8x12xf32> to vector<8x12xf32>
    %cst_21 = arith.constant dense<0.000000e+00> : vector<8x8xf32>
    %81 = tpu.matmul %80, %78, %cst_21 {dimension_numbers = #tpu.dot_dimension_numbers<[1], [0], [0], [1], [0, 0, 1, 1], [], []>} : vector<8x12xf32>, vector<12x8xf32>, vector<8x8xf32> -> vector<8x8xf32>
    %82 = vector.extract_strided_slice %1 {offsets = [3, 0, 0], sizes = [1, 8, 1], strides = [1, 1, 1]} : vector<8x12x1xf32> to vector<1x8x1xf32>
    %83 = vector.shape_cast %82 : vector<1x8x1xf32> to vector<8x1xf32>
    %84 = vector.broadcast %83 : vector<8x1xf32> to vector<8x8xf32>
    %85 = arith.addf %81, %84 : vector<8x8xf32>
    %cst_22 = arith.constant 0.000000e+00 : f32
    %86 = vector.broadcast %cst_22 : f32 to vector<8x8xf32>
    %87 = arith.maximumf %85, %86 : vector<8x8xf32>
    %88 = vector.extract_strided_slice %0 {offsets = [4, 0, 0], sizes = [1, 4, 8], strides = [1, 1, 1]} : vector<6x12x12xf32> to vector<1x4x8xf32>
    %89 = vector.shape_cast %88 : vector<1x4x8xf32> to vector<4x8xf32>
    %cst_23 = arith.constant dense<0.000000e+00> : vector<4x8xf32>
    %90 = tpu.matmul %89, %87, %cst_23 {dimension_numbers = #tpu.dot_dimension_numbers<[1], [0], [0], [1], [0, 0, 1, 1], [], []>} : vector<4x8xf32>, vector<8x8xf32>, vector<4x8xf32> -> vector<4x8xf32>
    %91 = vector.extract_strided_slice %1 {offsets = [4, 0, 0], sizes = [1, 4, 1], strides = [1, 1, 1]} : vector<8x12x1xf32> to vector<1x4x1xf32>
    %92 = vector.shape_cast %91 : vector<1x4x1xf32> to vector<4x1xf32>
    %93 = vector.broadcast %92 : vector<4x1xf32> to vector<4x8xf32>
    %94 = arith.addf %90, %93 : vector<4x8xf32>
    %cst_24 = arith.constant 0.000000e+00 : f32
    %95 = vector.broadcast %cst_24 : f32 to vector<4x8xf32>
    %96 = arith.maximumf %94, %95 : vector<4x8xf32>
    %97 = vector.extract_strided_slice %0 {offsets = [5, 0, 0], sizes = [1, 1, 4], strides = [1, 1, 1]} : vector<6x12x12xf32> to vector<1x1x4xf32>
    %98 = vector.shape_cast %97 : vector<1x1x4xf32> to vector<1x4xf32>
    %cst_25 = arith.constant dense<0.000000e+00> : vector<1x8xf32>
    %99 = tpu.matmul %98, %96, %cst_25 {dimension_numbers = #tpu.dot_dimension_numbers<[1], [0], [0], [1], [0, 0, 1, 1], [], []>} : vector<1x4xf32>, vector<4x8xf32>, vector<1x8xf32> -> vector<1x8xf32>
    %100 = vector.extract_strided_slice %1 {offsets = [5, 0, 0], sizes = [1, 1, 1], strides = [1, 1, 1]} : vector<8x12x1xf32> to vector<1x1x1xf32>
    %101 = vector.shape_cast %100 : vector<1x1x1xf32> to vector<1x1xf32>
    %102 = vector.broadcast %101 : vector<1x1xf32> to vector<1x8xf32>
    %103 = arith.addf %99, %102 : vector<1x8xf32>
    %c0_26 = arith.constant 0 : index
    %c0_27 = arith.constant 0 : index
    %c0_28 = arith.constant 0 : index
    %104 = vector.load %arg7[%c0_26, %c0_27, %c0_28] : memref<1x1x8xf32, #tpu.memory_space<vmem>>, vector<1x1x8xf32>
    %105 = vector.shape_cast %104 : vector<1x1x8xf32> to vector<1x8xf32>
    %106 = vector.shape_cast %103 : vector<1x8xf32> to vector<1x1x8xf32>
    tpu.vector_store %arg7[%c0_26, %c0_27, %c0_28], %106 {strides = array<i32>} : memref<1x1x8xf32, #tpu.memory_space<vmem>>, vector<1x1x8xf32>,
    return
  }
  func.func @transform_0(%arg0: i32) -> (i32, i32, i32) {
    %c0_i32 = arith.constant 0 : i32
    %c0_i32_0 = arith.constant 0 : i32
    %c0_i32_1 = arith.constant 0 : i32
    return %arg0, %c0_i32, %c0_i32_0 : i32, i32, i32
  }
  func.func @transform_1(%arg0: i32) -> (i32, i32, i32) {
    %c0_i32 = arith.constant 0 : i32
    %c0_i32_0 = arith.constant 0 : i32
    %c0_i32_1 = arith.constant 0 : i32
    %c0_i32_2 = arith.constant 0 : i32
    return %c0_i32, %c0_i32_0, %c0_i32_1 : i32, i32, i32
  }
  func.func @transform_2(%arg0: i32) -> (i32, i32, i32) {
    %c0_i32 = arith.constant 0 : i32
    %c0_i32_0 = arith.constant 0 : i32
    %c0_i32_1 = arith.constant 0 : i32
    %c0_i32_2 = arith.constant 0 : i32
    return %c0_i32, %c0_i32_0, %c0_i32_1 : i32, i32, i32
  }
  func.func @transform_3(%arg0: i32) -> (i32, i32, i32) {
    %c0_i32 = arith.constant 0 : i32
    %c0_i32_0 = arith.constant 0 : i32
    %c0_i32_1 = arith.constant 0 : i32
    %c0_i32_2 = arith.constant 0 : i32
    return %c0_i32, %c0_i32_0, %c0_i32_1 : i32, i32, i32
  }
  func.func @transform_4(%arg0: i32) -> (i32, i32, i32) {
    %c0_i32 = arith.constant 0 : i32
    %c0_i32_0 = arith.constant 0 : i32
    %c0_i32_1 = arith.constant 0 : i32
    %c0_i32_2 = arith.constant 0 : i32
    return %c0_i32, %c0_i32_0, %c0_i32_1 : i32, i32, i32
  }
  func.func @transform_5(%arg0: i32) -> (i32, i32, i32) {
    %c0_i32 = arith.constant 0 : i32
    %c0_i32_0 = arith.constant 0 : i32
    %c0_i32_1 = arith.constant 0 : i32
    %c0_i32_2 = arith.constant 0 : i32
    return %c0_i32, %c0_i32_0, %c0_i32_1 : i32, i32, i32
  }
  func.func @transform_6(%arg0: i32) -> (i32, i32, i32) {
    %c0_i32 = arith.constant 0 : i32
    %c0_i32_0 = arith.constant 0 : i32
    %c0_i32_1 = arith.constant 0 : i32
    return %arg0, %c0_i32, %c0_i32_0 : i32, i32, i32
  }
}

</mosaic_0001>

<bundles_post_ra>
// kernel: tpu_custom_call.1
= control target key start
LH: loop header
LB: loop body
LE: loop exit
PB: predicated region body
PF: predicated region fallthrough
CT: control target
= control target key end

     0   :  { %11 = vsyncpa [#allocation3], 0  ;;  %s3657_s0 = inlined_call_operand.vmem [shape: f32[2,1,8], index: 0, kind: input, shape index: {}]   ;;  %s3658_s1 = inlined_call_operand.vmem [shape: f32[6,12,12], index: 1, kind: input, shape index: {}]   ;;  %s3659_s2 = inlined_call_operand.vmem [shape: f32[8,12,1], index: 2, kind: input, shape index: {}]   ;;  %s3660_s3 = inlined_call_operand.vmem [shape: f32[8,96,12], index: 3, kind: input, shape index: {}]   ;;  %s3661_s4 = inlined_call_operand.vmem [shape: f32[8,12,48], index: 4, kind: input, shape index: {}]   ;;  %s3662_s5 = inlined_call_operand.vmem [shape: f32[8,156,1], index: 5, kind: input, shape index: {}]   ;;  %s3663_s6 = inlined_call_operand.hbm [shape: f32[2,1,8], index: 6, kind: output, shape index: {}]  }
   0x1   :  { %13 = vsyncpa [#allocation3 + $0x1], 0  ;;  %s3177_s21 = smov 0   ;;  %s3179_s22 = smov 0  }
   0x2   :  { %s3181_s23 = smov 0   ;;  %s3183_s24 = smov 0  }
   0x3 LB: > { %s3198_s25 = sadd.s32 4294967295, %s3118_s24   ;;  %s2665_s26 = sadd.s32 4294967294, %s3118_s24   ;;  %s3118_s24 = sphi %s3183_s24, %s3671_s24   ;;  %s3114_s23 = sphi %s3181_s23, %s3670_s23   ;;  %s3110_s22 = sphi %s3179_s22, %s3669_s22   ;;  %s3106_s21 = sphi %s3177_s21, %s3668_s21  }
   0x4   : > { %s3202_s27 = sadd.s32 1, %s3118_s24   ;;  %s157_s28 = sadd.s32 1, %s3114_s23 }
   0x5   : > { %s154_s29 = ssub.s32 %s3118_s24, %s3202_s27  ;;  %p167_p0 = scmp.ne.s32.totalorder %s3114_s23, %s3110_s22 }
   0x6   : > { %p155_p1 = scmp.eq.s32.totalorder %s154_s29, 0  ;;  %p168_p2 = scmp.eq.s32.totalorder %s3198_s25, 1 }
   0x7   : > { %p173_p3 = scmp.ne.s32.totalorder %s3110_s22, %s3106_s21  ;;  %p174_p4 = scmp.eq.s32.totalorder %s2665_s26, 1 }
   0x8   : > { %s3213_s30 = scalar_select %p155_p1, %s3114_s23, %s157_s28  }
   0x9   : > { %p3215_p5 = por %p168_p2, %p167_p0  ;;  %p3219_p6 = por %p174_p4, %p173_p3 }
   0xa   : > { %p2668_p7 = scmp.ge.s32.totalorder %s3118_s24, 1  ;;  %p213_p8 = scmp.lt.s32.totalorder %s3118_s24, 3 }
   0xc   : > { %p214_p9 = pnand %p2668_p7, %p213_p8 }
   0xd   : > { %s238_s9 = sand.u32 (!%p214_p9), 1, %s3110_s22   ;;  %p240_p10 = scmp.lt.s32.totalorder (!%p214_p9), %s3198_s25, 1 }
   0xe   : > { %217 = sbr.rel (%p214_p9) target bundleno = 4415 (0x113f), region = 44  ;;  %s3324_s28 = scalar_lea.vmem (!%p214_p9), [#allocation2], %s238_s9 }
  0x13   : > { %v3229_v0 = vld [vmem:[%s3658_s1 + $0x30] sm:$0xff]  ;;  %v3234_v1 = vld [vmem:[%s3658_s1 + $0x40] sm:$0xff]  ;;  %v262_v3 = vlaneseq  ;;  %v3132_v7 = vmov 0.0   ;;  %v3267_v9 = vld [vmem:[%s3659_s2 + $0x68] sm:$0xf]  ;;  %s241_s16 = scalar_select %p240_p10, %s3198_s25, 1 }
  0x14   : > { %v3239_v2 = vld [vmem:[%s3658_s1 + $0x50] sm:$0xff]  ;;  %v3250_v5 = vld [vmem:[%s3659_s2 + $0x40] sm:$0xff]  ;;  %2795 = vmatprep.subr.mxu0 %v3132_v7  ;;  %2800 = vmatprep.subr.mxu1 %v3132_v7  ;;  %v3277_v12 = vld [vmem:[%s3659_s2 + $0x78] sm:$0xf]  ;;  %vm3133_vm3 = vmmov 0   ;;  %v3134_v13 = vmov 0  }
  0x15   : > { %v3245_v4 = vld [vmem:[%s3659_s2 + $0x30] sm:$0xff]  ;;  %v3262_v8 = vld [vmem:[%s3659_s2 + $0x60] sm:$0xff]  ;;  %v263_v11 = vand.u32 127, %v262_v3  ;;  %2797 = vmatprep.mubr.msk.f32.mxu0 %vm3133_vm3, %v3132_v7  ;;  %3006 = vset.pattern.permute.xlu0 %v3134_v13  ;;  %s242_s29 = scalar_lea.vmem %s3657_s0, %s241_s16  ;;  %vm277_vm4 = vcmask 1040384   ;;  %vm288_vm5 = vcmask 1041408   ;;  %vm284_vm6 = vcmask 15360  }
  0x16   : > { %v3255_v6 = vld [vmem:[%s3659_s2 + $0x50] sm:$0xff]  ;;  %v250_v14 = vld [vmem:[%s3659_s2] sm:$0xff]  ;;  %2802 = vmatprep.mubr.msk.f32.mxu1 %vm3133_vm3, %v3132_v7  ;;  %3007 = vset.pattern.permute.xlu1 %v3134_v13  ;;  %vm372_vm7 = vcmask 1043456   ;;  %vm368_vm8 = vcmask 31744   ;;  %vm457_vm9 = vcmask 64512  }
  0x17   : > { %v3272_v10 = vld [vmem:[%s3659_s2 + $0x70] sm:$0xff]  ;;  %vm264_vm0 = vcmp.ge.s32.totalorder %v263_v11, 2  ;;  %vm267_vm1 = vcmp.ge.s32.totalorder %v263_v11, 4  ;;  %vm271_vm2 = vcmp.ge.s32.totalorder %v263_v11, 6  ;;  %281 = vperm.xlu0 %3006, %v250_v14   ;;  %v261_v22 = vld [vmem:[%s242_s29] sm:$0x1] }
  0x18   : > { %v2669_v15 = vsel %vm264_vm0, 1.0, %v3132_v7  ;;  %v2670_v16 = vsel %vm267_vm1, 1.0, %v3132_v7  ;;  %v2671_v17 = vsel %vm271_vm2, 1.0, %v3132_v7  ;;  %v251_v19 = vld [vmem:[%s3659_s2 + $0x10] sm:$0xff]  ;;  %v243_v24 = vld [vmem:[%s3658_s1] sm:$0xff]  ;;  %s3330_s29 = smov 0  }
  0x19   : > { %v270_v18 = vadd.f32 %v2670_v16, %v2669_v15  ;;  %v244_v31 = vld [vmem:[%s3658_s1 + $0x10] sm:$0xff]  ;;  %v245_v32 = vld [vmem:[%s3658_s1 + $0x20] sm:$0xff]  ;;  %v253_v34 = vld [vmem:[%s3659_s2 + $0x28] sm:$0xf] }
  0x1a   : > { %v252_v33 = vld [vmem:[%s3659_s2 + $0x20] sm:$0xff]  ;;  %v246_v40 = vld [vmem:[%s3658_s1 + $0x28] sm:$0xf] }
  0x1b   : > { %v274_v20 = vadd.f32 %v2671_v17, %v270_v18  ;;  %365 = vperm.xlu0 %3006, %v251_v19   ;;  %449 = vperm.xlu1 %3007, %v252_v33  }
  0x1d   : > { %v275_v21 = vmul.f32 0.6666667, %v274_v20 }
  0x1f   : > { %v276_v23 = vadd.f32 -1.0, %v275_v21  ;;  %454 = vperm.xlu1 %3007, %v253_v34  }
  0x21   : > { %v278_v25 = vsel %vm277_vm4, %v261_v22, %v276_v23 }
  0x22   : > { %2796 = vmatpush3.msk.msra.mxu0 %vm288_vm5, %v278_v25 }
  0x23   : > { %2798 = vmatmul.mubr.msk.f32.vlgmr.msra.gmra.mxu0 %vm284_vm6, %v243_v24 }
  0x24   : > { %2807 = vmatprep.mubr.msk.f32.mxu0 %vm457_vm9, %v245_v32 }
  0x92   : > { %v282_v26 = vpop.permute.xlu0 %281 }
  0x96   : > { %v366_v35 = vpop.permute.xlu0 %365  ;;  %v450_v41 = vpop.permute.xlu1 %449 }
  0x9a   : > { %v455_v43 = vpop.permute.xlu1 %454 }
  0xe3   : > { %v358_v27 = vpop.f32.mrf.mxu0 }
  0xe4   : > { %v359_v28 = vadd.f32 %v358_v27, %v282_v26 }
  0xe5   : > { %v2799_v29 = vpop.f32.mrf.mxu0 }
  0xe6   : > { %v362_v30 = vmax.f32 %v359_v28, 0.0 }
  0xe8   : > { %2801 = vmatpush3.msk.msra.mxu1 %vm372_vm7, %v362_v30 }
  0xe9   : > { %2803 = vmatmul.mubr.msk.f32.vlgmr.msra.gmra.mxu1 %vm368_vm8, %v244_v31 }
 0x1a9   : > { %v442_v36 = vpop.f32.mrf.mxu1 }
 0x1aa   : > { %v443_v37 = vadd.f32 %v442_v36, %v366_v35 }
 0x1ab   : > { %v2804_v38 = vpop.f32.mrf.mxu1 }
 0x1ac   : > { %v446_v39 = vmax.f32 %v443_v37, 0.0 }
 0x1ae   : > { %2805 = vmatprep.subr.mxu0 %v446_v39 }
 0x1af   : > { %2806 = vmatpush3.msra.mxu0 %v446_v39 }
 0x1b0   : > { %2808 = vmatmul.mubr.msk.f32.vlgmr.msra.gmra.mxu0 %vm457_vm9, %v246_v40 }
 0x270   : > { %v2809_v42 = vpop.f32.mrf.mxu0 }
 0x271   : > { %v536_v44 = vadd.f32 %v2809_v42, %v455_v43 }
 0x272   : > { %v530_v45 = vpop.f32.mrf.mxu0 }
 0x273   : > { %v540_v46 = vmax.f32 %v536_v44, 0.0   ;;  %v531_v47 = vadd.f32 %v530_v45, %v450_v41 }
 0x275   : > { %v539_v48 = vmax.f32 %v531_v47, 0.0  }
 0x276 LB: >> { %v3135_v49 = vmov 0   ;;  %s567_s10 = smul.u32 160, %s3130_s29  ;;  %v3136_v54 = vmov 0.0   ;;  %vm3137_vm10 = vmmov 0   ;;  %vm590_vm11 = vcmask 60416   ;;  %s3138_s18 = smov 125   ;;  %s3130_s29 = sphi %s3330_s29, %s546_s29   ;;  %v3126_v48 = vphi %v539_v48, %v3667_v48   ;;  %v3122_v46 = vphi %v540_v46, %v3666_v46  }
 0x277   : >> { %3008 = vset.pattern.permute.xlu0 %v3135_v49  ;;  %3009 = vset.pattern.permute.xlu1 %v3135_v49  ;;  %v589_v56 = vsel %vm457_vm9, %v3126_v48, 0.0  ;;  %v591_v57 = vsel %vm590_vm11, %v3122_v46, 0.0  ;;  %s549_s14 = smul.u32 96, %s3130_s29  ;;  %vm667_vm12 = vcmask 97280   ;;  %vm814_vm13 = vcmask 1042432   ;;  %s3139_s19 = smov 122  }
 0x278   : >> { %s3345_s13 = scalar_lea.vmem %s3662_s5, %s567_s10  ;;  %2810 = vmatprep.subr.mxu0 %v3136_v54  ;;  %2829 = vmatprep.subr.mxu1 %v3136_v54  ;;  %v592_v58 = vadd.f32 %v591_v57, %v589_v56  ;;  %vm810_vm14 = vcmask 23552   ;;  %s3140_s20 = smov 119   ;;  %vm2200_vm15 = vcmask 392192  }
 0x279   : >> { %v570_v50 = vld [vmem:[%s3345_s13 + $0x8] sm:$0xff]  ;;  %v569_v51 = vld [vmem:[%s3345_s13] sm:$0xff]  ;;  %v571_v52 = vld [vmem:[%s3345_s13 + $0x10] sm:$0xff]  ;;  %2814 = vmatprep.mubr.msk.f32.mxu0 %vm3137_vm10, %v3136_v54  ;;  %2831 = vmatprep.mubr.msk.f32.mxu1 %vm3137_vm10, %v3136_v54  ;;  %s3370_s17 = scalar_lea.vmem %s3660_s3, %s549_s14  ;;  %s2678_s26 = sshll.u32 %s3130_s29, 4 }
 0x27a   : >> { %626 = vperm.xlu0 %3008, %v570_v50   ;;  %621 = vperm.xlu1 %3009, %v569_v51   ;;  %v572_v53 = vld [vmem:[%s3345_s13 + $0x18] sm:$0xff]  ;;  %v573_v55 = vld [vmem:[%s3345_s13 + $0x20] sm:$0xff]  ;;  %v593_v59 = vrot.slane %v592_v58, 4  ;;  %v552_v43 = vld [vmem:[%s3370_s17 + $0x8] sm:$0xff]  ;;  %s3554_s12 = scalar_lea.vmem %s3661_s4, %s2678_s26  ;;  %s546_s29 = sadd.s32 1, %s3130_s29  }
 0x27b   : >> { %v551_v42 = vld [vmem:[%s3370_s17] sm:$0xff]  ;;  %v553_v44 = vld [vmem:[%s3370_s17 + $0x10] sm:$0xff]  ;;  %v554_v45 = vld [vmem:[%s3370_s17 + $0x18] sm:$0xff]  ;;  %p543_p11 = scmp.ge.s32.totalorder %s546_s29, 8  }
 0x27c   : >> { %v594_v60 = vadd.f32 %v593_v59, %v592_v58  ;;  %s2727_s29 = sshll.u32 (%p543_p11), %s3198_s25, 4  ;;  %vm2581_vm0 = vcmask (%p543_p11), 57344   ;;  %s3141_s25 = smov (%p543_p11), [#allocation2]  }
 0x27d   : > { %s3619_s16 = scalar_lea.hbm (%p543_p11), %s3663_s6, %s2727_s29 }
 0x27e   : >> { %633 = vperm.xlu0 %3008, %v571_v52   ;;  %644 = vperm.xlu1 %3009, %v572_v53   ;;  %v595_v61 = vrot.slane %v594_v60, 2 }
 0x280   : >> { %v596_v62 = vadd.f32 %v595_v61, %v594_v60 }
 0x282   : >> { %649 = vperm.xlu0 %3008, %v573_v55   ;;  %v597_v63 = vrot.slane %v596_v62, 1 }
 0x284   : >> { %v598_v3 = vadd.f32 %v597_v63, %v596_v62 }
 0x286   : >> { %v600_v11 = vmul.f32 0.083333336, %v598_v3  ;;  %v575_v3 = vld [vmem:[%s3345_s13 + $0x30] sm:$0xff] }
 0x288   : >> { %v601_v14 = vsub.f32 %v3126_v48, %v600_v11  ;;  %v602_v15 = vsub.f32 %v3122_v46, %v600_v11 }
 0x28a   : >> { %v603_v16 = vmul.f32 %v601_v14, %v601_v14  ;;  %v604_v17 = vmul.f32 %v602_v15, %v602_v15 }
 0x28c   : >> { %v605_v18 = vsel %vm457_vm9, %v603_v16, 0.0  ;;  %v606_v19 = vsel %vm590_vm11, %v604_v17, 0.0 }
 0x28d   : >> { %v607_v20 = vadd.f32 %v606_v19, %v605_v18 }
 0x28f   : >> { %v608_v21 = vrot.slane %v607_v20, 4 }
 0x291   : >> { %v609_v22 = vadd.f32 %v608_v21, %v607_v20 }
 0x293   : >> { %v610_v23 = vrot.slane %v609_v22, 2 }
 0x295   : >> { %v611_v24 = vadd.f32 %v610_v23, %v609_v22 }
 0x297   : >> { %v612_v25 = vrot.slane %v611_v24, 1 }
 0x299   : >> { %v613_v26 = vadd.f32 %v612_v25, %v611_v24  ;;  %v574_v24 = vld [vmem:[%s3345_s13 + $0x28] sm:$0xff]  ;;  %v555_v25 = vld [vmem:[%s3370_s17 + $0x20] sm:$0xff] }
 0x29b   : >> { %v614_v27 = vmul.f32 0.083333336, %v613_v26 }
 0x29d   : >> { %v615_v28 = vadd.f32 1e-06, %v614_v27 }
 0x29f   : >> { %3010 = vrsqrt.f32 %v615_v28 }
 0x2ac   : >> { %v3011_v29 = vpop.eup %3010 }
 0x2ad   : >> { %v617_v31 = vmul.f32 %v3011_v29, %v601_v14  ;;  %v618_v32 = vmul.f32 %v3011_v29, %v602_v15 }
 0x2f5   : >> { %v627_v30 = vpop.permute.xlu0 %626  ;;  %v622_v33 = vpop.permute.xlu1 %621 }
 0x2f6   : >> { %v629_v34 = vmul.f32 %v622_v33, %v617_v31  ;;  %v630_v36 = vmul.f32 %v627_v30, %v618_v32  ;;  %v635_v37 = vrot.slane %v627_v30, 4 }
 0x2f9   : >> { %v634_v35 = vpop.permute.xlu0 %633  ;;  %v645_v47 = vpop.permute.xlu1 %644 }
 0x2fa   : >> { %v636_v38 = vrot.slane %v634_v35, 4 }
 0x2fc   : >> { %v637_v39 = vsel %vm372_vm7, %v635_v37, %v636_v38  ;;  %v641_v40 = vadd.f32 %v636_v38, %v630_v36 }
 0x2fd   : >> { %v640_v41 = vadd.f32 %v637_v39, %v629_v34  ;;  %v650_v52 = vpop.permute.xlu0 %649 }
 0x2fe   : >> { %2811 = vmatpush3.msk.msra.mxu0 %vm372_vm7, %v641_v40 }
 0x2ff   : >> { %2812 = vmatprep.subr.mxu0 %v3136_v54 }
 0x300   : >> { %2813 = vmatpush3.msra.mxu0 %v640_v41 }
 0x301   : >> { %2815 = vmatmul.mubr.msk.f32.vlgmr.msra.gmra.mxu0 %vm667_vm12, %v551_v42  ;;  %2859 = vmatprep.subr.mxu0 %v3136_v54 }
 0x302   : >> { %2817 = vmatprep.mubr.msk.f32.mxu0 %vm3137_vm10, %v3136_v54 }
 0x305   : >> { %2818 = vmatmul.mubr.msk.f32.gmra.mxu0 %vm667_vm12, %v552_v43 }
 0x306   : >> { %2820 = vmatprep.mubr.msk.f32.mxu0 %vm3137_vm10, %v3136_v54 }
 0x309   : >> { %2821 = vmatmul.mubr.msk.f32.gmra.mxu0 %vm667_vm12, %v553_v44 }
 0x30a   : >> { %2823 = vmatprep.mubr.msk.f32.mxu0 %vm3137_vm10, %v3136_v54 }
 0x30d   : >> { %2824 = vmatmul.mubr.msk.f32.gmra.mxu0 %vm667_vm12, %v554_v45 }
 0x30e   : >> { %2826 = vmatprep.mubr.msk.f32.mxu0 %vm3137_vm10, %v3136_v54 }
 0x311   : >> { %2827 = vmatmul.mubr.msk.f32.gmra.mxu0 %vm667_vm12, %v555_v25 }
 0x312   : >> { %2861 = vmatprep.mubr.msk.f32.mxu0 %vm3137_vm10, %v3136_v54 }
 0x3c1   : >> { %v752_v49 = vpop.f32.mrf.mxu0 }
 0x3c2   : >> { %v753_v50 = vadd.f32 %v752_v49, %v645_v47 }
 0x3c3   : >> { %v2816_v51 = vpop.f32.mrf.mxu0 }
 0x3c4   : >> { %776 = vxpose.xlu1.b32.start.end [1/1] (short) (narrow) %v753_v50, 8  ;;  %v1349_v57 = vrot.slane %v753_v50, 6  ;;  %v976_v26 = vrot.slane %v753_v50, 3 }
 0x3c5   : >> { %v757_v53 = vpop.f32.mrf.mxu0 }
 0x3c6   : >> { %v3392_v55 = vadd.f32 %v757_v53, %v650_v52 }
 0x3c7   : >> { %v2819_v56 = vpop.f32.mrf.mxu0 }
 0x3c8   : >> { %v809_v58 = vrot.slane %v3392_v55, 4  ;;  %v1350_v59 = vrot.slane %v3392_v55, 6  ;;  %v1011_v37 = vrot.slane %v3392_v55, 7 }
 0x3c9   : >> { %v762_v60 = vpop.f32.mrf.mxu0 }
 0x3ca   : >> { %2830 = vmatpush3.msk.msra.mxu1 %vm814_vm13, %v809_v58  ;;  %v1351_v61 = vsel %vm288_vm5, %v1349_v57, %v1350_v59 }
 0x3cb   : >> { %v2822_v62 = vpop.f32.mrf.mxu0  ;;  %2834 = vmatprep.subr.mxu1 %v3136_v54 }
 0x3cd   : >> { %v767_v63 = vpop.f32.mrf.mxu0 }
 0x3cf   : >> { %v2825_v11 = vpop.f32.mrf.mxu0 }
 0x3d1   : >> { %v3431_v40 = vpop.f32.mrf.mxu0 }
 0x3d3   : >> { %v2828_v41 = vpop.f32.mrf.mxu0 }
 0x3e2   : >> { %659 = vperm.xlu1 %3009, %v575_v3  }
 0x40b   : >> { %1353 = vxpose.xlu1.b32.start.end [1/1] (short) (narrow) %v1351_v61, 8 }
 0x440   : >> { %v792_v14 = vpop.trf.xlu1 }
 0x441   : >> { %2832 = vmatmul.mubr.msk.f32.vlgmr.msra.gmra.mxu1 %vm810_vm14, %v792_v14  ;;  %v556_v14 = vld [vmem:[%s3370_s17 + $0x28] sm:$0xff] }
 0x442   : >> { %2836 = vmatprep.mubr.msk.f32.mxu1 %vm3137_vm10, %v3136_v54 }
 0x45d   : >> { %v660_v28 = vpop.permute.xlu1 %659 }
 0x45e   : >> { %v3417_v36 = vadd.f32 %v767_v63, %v660_v28 }
 0x487   : >> { %v1369_v32 = vpop.trf.xlu1 }
 0x501   : >> { %v883_v15 = vpop.f32.mrf.mxu1 }
 0x502   : >> { %v887_v16 = vmul.f32 0.57735026, %v883_v15  ;;  %v1178_v15 = vrot.slane %v555_v25, 4 }
 0x503   : >> { %v2833_v17 = vpop.f32.mrf.mxu1 }
 0x504   : >> { %v888_v18 = vsel %vm457_vm9, %v887_v16, -inf }
 0x505   : >> { %889 = vmax.xlane.f32.xlu0 %v888_v18  ;;  %v576_v18 = vld [vmem:[%s3345_s13 + $0x38] sm:$0xff] }
 0x58e   : >> { %v890_v19 = vpop.xlane.xlu0 %889 }
 0x58f   : >> { %v891_v20 = vsub.f32 %v887_v16, %v890_v19  ;;  %v3440_v16 = vrot.slane %v556_v14, 4  ;;  %v1640_v19 = vrot.slane %v3392_v55, 1  ;;  %v1101_v55 = vrot.slane %v3417_v36, 3  ;;  %v585_v14 = vld [vmem:[%s3345_s13 + $0x80] sm:$0xff] }
 0x591   : >> { %v892_v21 = vmul.f32 1.442695, %v891_v20  ;;  %v3444_v17 = vsel %vm372_vm7, %v1178_v15, %v3440_v16  ;;  %v580_v20 = vld [vmem:[%s3345_s13 + $0x58] sm:$0xff]  ;;  %v583_v15 = vld [vmem:[%s3345_s13 + $0x70] sm:$0xff] }
 0x593   : >> { %3012 = vpow2.f32 %v892_v21  ;;  %v586_v21 = vld [vmem:[%s3345_s13 + $0x88] sm:$0xff] }
 0x5a0   : >> { %v3013_v22 = vpop.eup %3012 }
 0x5a1   : >> { %v894_v23 = vsel %vm457_vm9, %v3013_v22, 0.0 }
 0x5a2   : >> { %895 = vadd.xlane.f32.xlu0 %v894_v23  ;;  %v582_v23 = vld [vmem:[%s3345_s13 + $0x68] sm:$0xff] }
 0x5b8   : >> { %654 = vperm.xlu0 %3008, %v574_v24   ;;  %v587_v24 = vld [vmem:[%s3345_s13 + $0x90] sm:$0xff] }
 0x5d6   : >> { %978 = vxpose.xlu0.b32.start.end [1/1] (short) (narrow) %v976_v26, 8 }
 0x62b   : >> { %v896_v27 = vpop.xlane.xlu0 %895 }
 0x62c   : >> { %3014 = vrcp.f32 %v896_v27 }
 0x633   : >> { %v655_v29 = vpop.permute.xlu0 %654 }
 0x634   : >> { %v3410_v30 = vadd.f32 %v762_v60, %v655_v29 }
 0x636   : >> { %v1385_v31 = vrot.slane %v3410_v30, 2  ;;  %v1012_v35 = vrot.slane %v3410_v30, 7  ;;  %v1674_v41 = vrot.slane %v3410_v30, 5 }
 0x638   : >> { %2860 = vmatpush3.msk.msra.mxu0 %vm814_vm13, %v1385_v31  ;;  %v1013_v38 = vsel %vm277_vm4, %v1011_v37, %v1012_v35 }
 0x639   : >> { %v3015_v33 = vpop.eup %3014  ;;  %2862 = vmatmul.mubr.msk.f32.vlgmr.msra.gmra.mxu0 %vm810_vm14, %v1369_v32 }
 0x63a   : >> { %v898_v34 = vmul.f32 %v3015_v33, %v3013_v22  ;;  %v584_v22 = vld [vmem:[%s3345_s13 + $0x78] sm:$0xff] }
 0x63c   : >> { %2835 = vmatpush3.xpose.msk.msra.mxu1 %vm457_vm9, %v898_v34 }
 0x63d   : >> { %2839 = vmatprep.subr.mxu1 %v3136_v54 }
 0x63f   : >> { %2837 = vmatmul.mubr.msk.f32.vlgmr.msra.gmra.mxu1 %vm457_vm9, %v3417_v36 }
 0x640   : >> { %2840 = vmatpush3.msk.msra.mxu1 %vm814_vm13, %v1013_v38  ;;  %2841 = vmatprep.mubr.msk.f32.mxu1 %vm3137_vm10, %v3136_v54 }
 0x641   : >> { %2844 = vmatprep.subr.mxu1 %v3136_v54 }
 0x652   : >> { %v994_v39 = vpop.trf.xlu0 }
 0x653   : >> { %2842 = vmatmul.mubr.msk.f32.vlgmr.msra.gmra.mxu1 %vm810_vm14, %v994_v39 }
 0x654   : >> { %2846 = vmatprep.mubr.msk.f32.mxu1 %vm3137_vm10, %v3136_v54 }
 0x6f9   : >> { %v1457_v42 = vpop.f32.mrf.mxu0 }
 0x6fa   : >> { %v1461_v50 = vmul.f32 0.57735026, %v1457_v42 }
 0x6fb   : >> { %v2863_v43 = vpop.f32.mrf.mxu0 }
 0x6fc   : >> { %v1462_v53 = vsel %vm457_vm9, %v1461_v50, -inf }
 0x6ff   : >> { %v3433_v44 = vpop.f32.mrf.mxu1 }
 0x701   : >> { %v2838_v45 = vpop.f32.mrf.mxu1 }
 0x713   : >> { %v1085_v47 = vpop.f32.mrf.mxu1 }
 0x714   : >> { %v1089_v49 = vmul.f32 0.57735026, %v1085_v47 }
 0x715   : >> { %v2843_v51 = vpop.f32.mrf.mxu1 }
 0x716   : >> { %v1090_v52 = vsel %vm457_vm9, %v1089_v49, -inf }
 0x717   : >> { %1091 = vmax.xlane.f32.xlu0 %v1090_v52 }
 0x71b   : >> { %1463 = vmax.xlane.f32.xlu0 %v1462_v53 }
 0x7a0   : >> { %v1092_v56 = vpop.xlane.xlu0 %1091 }
 0x7a1   : >> { %v1093_v57 = vsub.f32 %v1089_v49, %v1092_v56 }
 0x7a3   : >> { %v1094_v58 = vmul.f32 1.442695, %v1093_v57 }
 0x7a4   : >> { %v1464_v59 = vpop.xlane.xlu0 %1463 }
 0x7a5   : >> { %3016 = vpow2.f32 %v1094_v58  ;;  %v1465_v60 = vsub.f32 %v1461_v50, %v1464_v59 }
 0x7a7   : >> { %v1466_v61 = vmul.f32 1.442695, %v1465_v60 }
 0x7a9   : >> { %3018 = vpow2.f32 %v1466_v61 }
 0x7b2   : >> { %v3017_v62 = vpop.eup %3016 }
 0x7b3   : >> { %v1096_v63 = vsel %vm457_vm9, %v3017_v62, 0.0 }
 0x7b4   : >> { %1097 = vadd.xlane.f32.xlu1 %v1096_v63  ;;  %v577_v63 = vld [vmem:[%s3345_s13 + $0x40] sm:$0xff] }
 0x7b6   : >> { %v3019_v3 = vpop.eup %3018 }
 0x7b7   : >> { %v1468_v11 = vsel %vm457_vm9, %v3019_v3, 0.0 }
 0x7b8   : >> { %1469 = vadd.xlane.f32.xlu0 %v1468_v11  ;;  %v578_v11 = vld [vmem:[%s3345_s13 + $0x48] sm:$0xff] }
 0x7c5   : >> { %1181 = vrot.lane.b32.xlu1 %v3444_v17, %s3138_s18 }
 0x7ce   : >> { %664 = vperm.xlu0 %3008, %v576_v18   ;;  %v581_v18 = vld [vmem:[%s3345_s13 + $0x60] sm:$0xff] }
 0x7d2   : >> { %1183 = vrot.lane.b32.xlu0 %v3440_v16, %s3138_s18 }
 0x7ee   : >> { %1642 = vxpose.xlu1.b32.start.end [1/1] (short) (narrow) %v1640_v19, 8  ;;  %v588_v19 = vld [vmem:[%s3345_s13 + $0x98] sm:$0xf] }
 0x80c   : >> { %1554 = vrot.lane.b32.xlu1 %v3440_v16, %s3139_s19 }
 0x810   : >> { %1981 = vperm.xlu1 %3009, %v580_v20  }
 0x814   : >> { %2017 = vperm.xlu1 %3009, %v586_v21  }
 0x818   : >> { %2007 = vperm.xlu1 %3009, %v584_v22  }
 0x81c   : >> { %1997 = vperm.xlu1 %3009, %v582_v23  }
 0x820   : >> { %2192 = vperm.xlu1 %3009, %v587_v24  }
 0x824   : > { %3043 = vset.pattern.permute.xlu1 (%p543_p11), %v3134_v13 }
 0x825   : > { %2333 = vperm.xlu1 (%p543_p11), %3043, %v3277_v12  }
 0x829   : > { %2328 = vperm.xlu1 (%p543_p11), %3043, %v3272_v10  }
 0x82d   : > { %2423 = vperm.xlu1 (%p543_p11), %3043, %v3250_v5  }
 0x83d   : >> { %v1098_v25 = vpop.xlane.xlu1 %1097 }
 0x83e   : >> { %3020 = vrcp.f32 %v1098_v25 }
 0x841   : >> { %v1182_v28 = vpop.permute.xlu1 %1181  ;;  %v1470_v29 = vpop.xlane.xlu0 %1469 }
 0x842   : >> { %3022 = vrcp.f32 %v1470_v29 }
 0x849   : >> { %v3461_v31 = vpop.permute.xlu0 %664 }
 0x84a   : >> { %v3466_v34 = vadd.f32 %v3431_v40, %v3461_v31  ;;  %v1474_v40 = vrot.slane %v3417_v36, 6 }
 0x84b   : >> { %v3021_v26 = vpop.eup %3020 }
 0x84c   : >> { %v1100_v27 = vmul.f32 %v3021_v26, %v3017_v62  ;;  %v1475_v38 = vrot.slane %v3466_v34, 6  ;;  %v1762_v24 = vrot.slane %v3466_v34, 1 }
 0x84d   : >> { %v1184_v33 = vpop.permute.xlu0 %1183 }
 0x84e   : >> { %2845 = vmatpush3.xpose.msk.msra.mxu1 %vm457_vm9, %v1100_v27  ;;  %v1476_v42 = vsel %vm288_vm5, %v1474_v40, %v1475_v38 }
 0x84f   : >> { %v3023_v37 = vpop.eup %3022 }
 0x850   : >> { %v1472_v39 = vmul.f32 %v3023_v37, %v3019_v3  ;;  %v579_v3 = vld [vmem:[%s3345_s13 + $0x50] sm:$0xff]  ;;  %s2596_s13 = sshll.u32 (%p543_p11), %s3324_s28, 4  ;;  %s2597_s13 = int_to_ptr.vmem [resolvable:$true] %s2596_s13 }
 0x851   : >> { %2847 = vmatmul.mubr.msk.f32.vlgmr.msra.gmra.mxu1 %vm457_vm9, %v1101_v55  ;;  %s3046_s18 = scalar_lea.vmem (%p543_p11), %s2597_s13, 16 }
 0x852   : >> { %2851 = vmatprep.mubr.msk.f32.mxu1 %vm810_vm14, %v1182_v28  ;;  %p3047_p12 = scmp.ne.s32.totalorder (%p543_p11), %s2597_s13, %s3046_s18 }
 0x854   : > { %p3048_p13 = pnand (%p543_p11), %p3047_p12, %p3215_p5 }
 0x856   : > { %p3049_p0 = pneg (%p543_p11), %p3048_p13 }
 0x86a   : >> { %v1658_v43 = vpop.trf.xlu1 }
 0x911   : >> { %v1173_v32 = vpop.f32.mrf.mxu1 }
 0x912   : >> { %2849 = vmatprep.subr.msk.mxu1 %vm814_vm13, %v1173_v32 }
 0x913   : >> { %v2848_v35 = vpop.f32.mrf.mxu1  ;;  %2850 = vmatpush3.msk.msra.mxu1 %vm814_vm13, %v1173_v32  ;;  %v557_v32 = vld [vmem:[%s3370_s17 + $0x30] sm:$0xff] }
 0x914   : >> { %2852 = vmatmul.mubr.msk.f32.vlgmr.msra.gmra.mxu1 %vm810_vm14, %v1184_v33  ;;  %2854 = vmatprep.subr.msk.mxu1 %vm814_vm13, %v3433_v44 }
 0x915   : >> { %2855 = vmatpush3.msk.msra.mxu1 %vm814_vm13, %v3433_v44  ;;  %2856 = vmatprep.mubr.msk.f32.mxu1 %vm810_vm14, %v3444_v17 }
 0x916   : >> { %2864 = vmatprep.subr.mxu1 %v3136_v54 }
 0x918   : >> { %2857 = vmatmul.mubr.msk.f32.vlgmr.msra.gmra.mxu1 %vm810_vm14, %v3440_v16 }
 0x919   : >> { %2865 = vmatpush3.xpose.msk.msra.mxu1 %vm457_vm9, %v1472_v39  ;;  %2866 = vmatprep.mubr.msk.f32.mxu1 %vm3137_vm10, %v3136_v54 }
 0x91a   : >> { %2874 = vmatprep.subr.mxu1 %v3136_v54 }
 0x91c   : >> { %2867 = vmatmul.mubr.msk.f32.vlgmr.msra.gmra.mxu1 %vm457_vm9, %v1476_v42 }
 0x91d   : >> { %2875 = vmatpush3.msk.msra.mxu1 %vm814_vm13, %v1674_v41  ;;  %2876 = vmatprep.mubr.msk.f32.mxu1 %vm3137_vm10, %v3136_v54  ;;  %v1932_v41 = vrot.slane %v3461_v31, 4 }
 0x920   : >> { %2877 = vmatmul.mubr.msk.f32.vlgmr.msra.gmra.mxu1 %vm810_vm14, %v1658_v43 }
 0x9d4   : >> { %v2853_v36 = vpop.f32.mrf.mxu1 }
 0x9d6   : >> { %v1258_v44 = vpop.f32.mrf.mxu1 }
 0x9d8   : >> { %v2858_v45 = vpop.f32.mrf.mxu1 }
 0x9d9   : >> { %v1346_v47 = vadd.f32 %v2858_v45, %v2853_v36 }
 0x9da   : >> { %v1340_v49 = vpop.f32.mrf.mxu1 }
 0x9db   : >> { %v1341_v50 = vadd.f32 %v1340_v49, %v1258_v44 }
 0x9dc   : >> { %v1548_v51 = vpop.f32.mrf.mxu1 }
 0x9dd   : >> { %2869 = vmatprep.subr.msk.mxu0 %vm814_vm13, %v1548_v51 }
 0x9de   : >> { %v2868_v30 = vpop.f32.mrf.mxu1  ;;  %2870 = vmatpush3.msk.msra.mxu0 %vm814_vm13, %v1548_v51 }
 0x9df   : >> { %2879 = vmatprep.subr.mxu0 %v3136_v54 }
 0x9e0   : >> { %v1746_v52 = vpop.f32.mrf.mxu1 }
 0x9e1   : >> { %v1750_v53 = vmul.f32 0.57735026, %v1746_v52 }
 0x9e2   : >> { %v2878_v56 = vpop.f32.mrf.mxu1 }
 0x9e3   : >> { %v1751_v57 = vsel %vm457_vm9, %v1750_v53, -inf }
 0x9e4   : >> { %1752 = vmax.xlane.f32.xlu0 %v1751_v57 }
 0xa6d   : >> { %v1753_v58 = vpop.xlane.xlu0 %1752 }
 0xa6e   : >> { %v1754_v59 = vsub.f32 %v1750_v53, %v1753_v58 }
 0xa70   : >> { %v1755_v60 = vmul.f32 1.442695, %v1754_v59 }
 0xa72   : >> { %3024 = vpow2.f32 %v1755_v60 }
 0xa7f   : >> { %v3025_v61 = vpop.eup %3024 }
 0xa80   : >> { %v1757_v62 = vsel %vm457_vm9, %v3025_v61, 0.0 }
 0xa81   : >> { %1758 = vadd.xlane.f32.xlu0 %v1757_v62 }
 0xa97   : >> { %1552 = vrot.lane.b32.xlu0 %v3444_v17, %s3139_s19  ;;  %s3050_s19 = sshll.u32 (%p543_p11), %s3141_s25, 4  ;;  %s3051_s19 = int_to_ptr.vmem [resolvable:$false] %s3050_s19 }
 0xa98   : > { %p3053_p1 = scmp.lt.s32.totalorder (%p543_p11), %s2597_s13, %s3051_s19 }
 0xa9b   : >> { %1838 = vrot.lane.b32.xlu0 %v3444_v17, %s3140_s20  ;;  %v1555_v17 = vpop.permute.xlu1 %1554 }
 0xa9f   : >> { %1840 = vrot.lane.b32.xlu0 %v3440_v16, %s3140_s20  ;;  %s3052_s20 = scalar_lea.vmem (%p543_p11), %s3051_s19, 32 }
 0xaa0   : > { %p3054_p2 = scmp.lt.s32.totalorder (%p543_p11), %s3052_s20, %s3046_s18 }
 0xaa2   : > { %p3055_p3 = por (%p543_p11), %p3054_p2, %p3053_p1 }
 0xaa3   : >> { %1930 = vperm.xlu0 %3008, %v577_v63  }
 0xaa4   : > { %p3056_p4 = pnand (%p543_p11), %p3055_p3, %p3049_p0 }
 0xaa7   : >> { %1974 = vperm.xlu0 %3008, %v579_v3  }
 0xaab   : >> { %1969 = vperm.xlu0 %3008, %v578_v11  }
 0xaaf   : >> { %2012 = vperm.xlu0 %3008, %v585_v14  }
 0xab3   : >> { %2002 = vperm.xlu0 %3008, %v583_v15  }
 0xab7   : >> { %1992 = vperm.xlu0 %3008, %v581_v18  }
 0xabb   : >> { %2197 = vperm.xlu0 %3008, %v588_v19  }
 0xabf   : > { %3042 = vset.pattern.permute.xlu0 (%p543_p11), %v3134_v13 }
 0xac0   : > { %2321 = vperm.xlu0 (%p543_p11), %3042, %v3267_v9  }
 0xac4   : > { %2316 = vperm.xlu0 (%p543_p11), %3042, %v3262_v8  }
 0xac8   : > { %2340 = vperm.xlu0 (%p543_p11), %3042, %v3245_v4  }
 0xacc   : > { %2502 = vperm.xlu0 (%p543_p11), %3042, %v3255_v6  }
 0xb0a   : >> { %v1759_v20 = vpop.xlane.xlu0 %1758 }
 0xb0b   : >> { %3026 = vrcp.f32 %v1759_v20 }
 0xb0e   : >> { %v1553_v21 = vpop.permute.xlu0 %1552 }
 0xb0f   : >> { %2871 = vmatprep.mubr.msk.f32.mxu0 %vm810_vm14, %v1553_v21 }
 0xb10   : >> { %2872 = vmatmul.mubr.msk.f32.vlgmr.msra.gmra.mxu0 %vm810_vm14, %v1555_v17  ;;  %v1982_v17 = vpop.permute.xlu1 %1981 }
 0xb11   : >> { %2881 = vmatprep.mubr.msk.f32.mxu0 %vm3137_vm10, %v3136_v54 }
 0xb12   : >> { %v1839_v16 = vpop.permute.xlu0 %1838 }
 0xb13   : >> { %2886 = vmatprep.mubr.msk.f32.mxu1 %vm810_vm14, %v1839_v16 }
 0xb16   : >> { %v1841_v54 = vpop.permute.xlu0 %1840 }
 0xb18   : >> { %v3027_v22 = vpop.eup %3026 }
 0xb19   : >> { %v1761_v23 = vmul.f32 %v3027_v22, %v3025_v61 }
 0xb1b   : >> { %2880 = vmatpush3.xpose.msk.msra.mxu0 %vm457_vm9, %v1761_v23 }
 0xb1e   : >> { %2882 = vmatmul.mubr.msk.f32.vlgmr.msra.gmra.mxu0 %vm457_vm9, %v1762_v24  ;;  %v1931_v33 = vpop.permute.xlu0 %1930 }
 0xb1f   : >> { %2893 = vmatprep.mubr.msk.f32.mxu0 %vm667_vm12, %v557_v32  ;;  %v1933_v37 = vrot.slane %v1931_v33, 4  ;;  %v559_v32 = vld [vmem:[%s3370_s17 + $0x40] sm:$0xff]  ;;  %v560_v33 = vld [vmem:[%s3370_s17 + $0x48] sm:$0xff] }
 0xb21   : >> { %v1934_v36 = vsel %vm372_vm7, %v1932_v41, %v1933_v37 }
 0xb22   : >> { %v1975_v20 = vpop.permute.xlu0 %1974 }
 0xb23   : >> { %v1983_v23 = vrot.slane %v1975_v20, 4 }
 0xb26   : >> { %v1970_v24 = vpop.permute.xlu0 %1969 }
 0xbd0   : >> { %v2873_v25 = vpop.f32.mrf.mxu0 }
 0xbd1   : >> { %v1639_v26 = vadd.f32 %v2873_v25, %v1346_v47  ;;  %v1984_v25 = vrot.slane %v1982_v17, 4 }
 0xbd2   : >> { %v1629_v27 = vpop.f32.mrf.mxu0 }
 0xbd3   : >> { %v1638_v55 = vadd.f32 %v1629_v27, %v1341_v50 }
 0xbde   : >> { %v1834_v28 = vpop.f32.mrf.mxu0 }
 0xbdf   : >> { %2884 = vmatprep.subr.msk.mxu1 %vm814_vm13, %v1834_v28 }
 0xbe0   : >> { %v2883_v29 = vpop.f32.mrf.mxu0  ;;  %2885 = vmatpush3.msk.msra.mxu1 %vm814_vm13, %v1834_v28  ;;  %v1985_v28 = vsel %vm372_vm7, %v1983_v23, %v1984_v25 }
 0xbe1   : >> { %2887 = vmatmul.mubr.msk.f32.vlgmr.msra.gmra.mxu1 %vm810_vm14, %v1841_v54  ;;  %v558_v29 = vld [vmem:[%s3370_s17 + $0x38] sm:$0xff] }
 0xca1   : >> { %v2888_v34 = vpop.f32.mrf.mxu1 }
 0xca2   : >> { %v1925_v35 = vadd.f32 %v2888_v34, %v1639_v26  ;;  %v561_v34 = vld [vmem:[%s3370_s17 + $0x50] sm:$0xff] }
 0xca3   : >> { %v1915_v38 = vpop.f32.mrf.mxu1 }
 0xca4   : >> { %v1927_v39 = vadd.f32 %v3122_v46, %v1925_v35  ;;  %v1924_v40 = vadd.f32 %v1915_v38, %v1638_v55  ;;  %v562_v35 = vld [vmem:[%s3370_s17 + $0x58] sm:$0xff]  ;;  %v2018_v38 = vpop.permute.xlu1 %2017  ;;  %s2584_s17 = scalar_lea.sflag (%p543_p11), [#allocation3], %s238_s9 }
 0xca6   : >> { %v3523_v42 = vadd.f32 %v1933_v37, %v1927_v39  ;;  %v1926_v43 = vadd.f32 %v3126_v48, %v1924_v40  ;;  %v565_v37 = vld [vmem:[%s3554_s12] sm:$0xff]  ;;  %v2013_v39 = vpop.permute.xlu0 %2012 }
 0xca7   : >> { %2914 = vmatprep.mubr.msk.f32.mxu1 %vm2200_vm15, %v565_v37 }
 0xca8   : >> { %v3527_v44 = vadd.f32 %v1934_v36, %v1926_v43  ;;  %v1940_v45 = vsel %vm590_vm11, %v3523_v42, 0.0  ;;  %v2008_v40 = vpop.permute.xlu1 %2007 }
 0xcaa   : >> { %v1939_v47 = vsel %vm457_vm9, %v3527_v44, 0.0  ;;  %v2003_v41 = vpop.permute.xlu0 %2002 }
 0xcab   : >> { %v1941_v49 = vadd.f32 %v1940_v45, %v1939_v47 }
 0xcac   : >> { %v1998_v43 = vpop.permute.xlu1 %1997 }
 0xcad   : >> { %v1942_v50 = vrot.slane %v1941_v49, 4 }
 0xcae   : >> { %v1993_v47 = vpop.permute.xlu0 %1992 }
 0xcaf   : >> { %v1943_v46 = vadd.f32 %v1942_v50, %v1941_v49 }
 0xcb1   : >> { %v1944_v51 = vrot.slane %v1943_v46, 2 }
 0xcb3   : >> { %v1945_v30 = vadd.f32 %v1944_v51, %v1943_v46 }
 0xcb5   : >> { %v1946_v31 = vrot.slane %v1945_v30, 1 }
 0xcb7   : >> { %v1947_v52 = vadd.f32 %v1946_v31, %v1945_v30 }
 0xcb9   : >> { %v1948_v53 = vmul.f32 0.083333336, %v1947_v52 }
 0xcbb   : >> { %v1949_v48 = vsub.f32 %v3527_v44, %v1948_v53  ;;  %v1950_v56 = vsub.f32 %v3523_v42, %v1948_v53 }
 0xcbd   : >> { %v1951_v57 = vmul.f32 %v1949_v48, %v1949_v48  ;;  %v1952_v58 = vmul.f32 %v1950_v56, %v1950_v56 }
 0xcbf   : >> { %v1953_v59 = vsel %vm457_vm9, %v1951_v57, 0.0  ;;  %v1954_v60 = vsel %vm590_vm11, %v1952_v58, 0.0 }
 0xcc0   : >> { %v1955_v61 = vadd.f32 %v1954_v60, %v1953_v59 }
 0xcc2   : >> { %v1956_v62 = vrot.slane %v1955_v61, 4 }
 0xcc4   : >> { %v1957_v63 = vadd.f32 %v1956_v62, %v1955_v61 }
 0xcc6   : >> { %v1958_v3 = vrot.slane %v1957_v63, 2 }
 0xcc8   : >> { %v1959_v11 = vadd.f32 %v1958_v3, %v1957_v63 }
 0xcca   : >> { %v1960_v14 = vrot.slane %v1959_v11, 1 }
 0xccc   : >> { %v1961_v15 = vadd.f32 %v1960_v14, %v1959_v11 }
 0xcce   : >> { %v1962_v18 = vmul.f32 0.083333336, %v1961_v15 }
 0xcd0   : >> { %v1963_v19 = vadd.f32 1e-06, %v1962_v18 }
 0xcd2   : >> { %3028 = vrsqrt.f32 %v1963_v19 }
 0xcdf   : >> { %v3029_v21 = vpop.eup %3028 }
 0xce0   : >> { %v1966_v16 = vmul.f32 %v3029_v21, %v1950_v56  ;;  %v1965_v22 = vmul.f32 %v3029_v21, %v1949_v48 }
 0xce2   : >> { %v1978_v26 = vmul.f32 %v1975_v20, %v1966_v16  ;;  %v1977_v27 = vmul.f32 %v1970_v24, %v1965_v22 }
 0xce4   : >> { %v1989_v55 = vadd.f32 %v1984_v25, %v1978_v26  ;;  %v1988_v54 = vadd.f32 %v1985_v28, %v1977_v27 }
 0xce6   : >> { %2889 = vmatprep.subr.msk.mxu0 %vm372_vm7, %v1989_v55 }
 0xce7   : >> { %2890 = vmatpush3.msk.msra.mxu0 %vm372_vm7, %v1989_v55 }
 0xce8   : >> { %2891 = vmatprep.subr.mxu0 %v1988_v54 }
 0xce9   : >> { %2892 = vmatpush3.msra.mxu0 %v1988_v54 }
 0xcea   : >> { %2894 = vmatmul.mubr.msk.f32.vlgmr.msra.gmra.mxu0 %vm667_vm12, %v558_v29  ;;  %2917 = vmatprep.subr.mxu0 (%p543_p11), %v3132_v7 }
 0xceb   : >> { %2896 = vmatprep.mubr.msk.f32.mxu0 %vm667_vm12, %v559_v32 }
 0xcee   : >> { %2897 = vmatmul.mubr.msk.f32.gmra.mxu0 %vm667_vm12, %v560_v33 }
 0xcef   : >> { %2899 = vmatprep.mubr.msk.f32.mxu0 %vm667_vm12, %v561_v34 }
 0xcf2   : >> { %2900 = vmatmul.mubr.msk.f32.gmra.mxu0 %vm667_vm12, %v562_v35 }
 0xcf3   : > { %2921 = vmatprep.mubr.msk.f32.mxu0 (%p543_p11), %vm3133_vm3, %v3132_v7 }
 0xdaa   : >> { %v2895_v36 = vpop.f32.mrf.mxu0 }
 0xdab   : >> { %v3558_v45 = vadd.f32 %v2895_v36, %v1998_v43 }
 0xdac   : >> { %v2107_v49 = vpop.f32.mrf.mxu0 }
 0xdad   : >> { %v3560_v50 = vadd.f32 %v2107_v49, %v1993_v47  ;;  %v2143_v51 = vmul.f32 0.044715, %v3558_v45 }
 0xdae   : >> { %v2898_v46 = vpop.f32.mrf.mxu0 }
 0xdaf   : >> { %v2123_v30 = vadd.f32 %v2898_v46, %v2008_v40  ;;  %v2142_v52 = vmul.f32 0.044715, %v3560_v50  ;;  %v2149_v57 = vmul.f32 %v2143_v51, %v3558_v45 }
 0xdb0   : >> { %v2117_v31 = vpop.f32.mrf.mxu0 }
 0xdb1   : >> { %v2145_v53 = vmul.f32 0.044715, %v2123_v30  ;;  %v2118_v48 = vadd.f32 %v2117_v31, %v2003_v41  ;;  %v2148_v62 = vmul.f32 %v2142_v52, %v3560_v50  ;;  %v2155_v20 = vmul.f32 %v2149_v57, %v3558_v45 }
 0xdb2   : >> { %v2901_v56 = vpop.f32.mrf.mxu0  ;;  %v2139_v31 = vmul.f32 0.5, %v2123_v30 }
 0xdb3   : >> { %v2151_v58 = vmul.f32 %v2145_v53, %v2123_v30  ;;  %v2144_v59 = vmul.f32 0.044715, %v2118_v48  ;;  %v2133_v60 = vadd.f32 %v2901_v56, %v2018_v38  ;;  %v2154_v23 = vmul.f32 %v2148_v62, %v3560_v50 }
 0xdb4   : >> { %v2127_v61 = vpop.f32.mrf.mxu0  ;;  %v2161_v27 = vadd.f32 %v2155_v20, %v3558_v45  ;;  %v2138_v57 = vmul.f32 0.5, %v2118_v48 }
 0xdb5   : >> { %v2150_v63 = vmul.f32 %v2144_v59, %v2118_v48  ;;  %v2147_v3 = vmul.f32 0.044715, %v2133_v60  ;;  %v2128_v11 = vadd.f32 %v2127_v61, %v2013_v39  ;;  %v2157_v14 = vmul.f32 %v2151_v58, %v2123_v30 }
 0xdb6   : >> { %v2160_v29 = vadd.f32 %v2154_v23, %v3560_v50  ;;  %v2167_v33 = vmul.f32 0.7978846, %v2161_v27  ;;  %v2141_v39 = vmul.f32 0.5, %v2133_v60 }
 0xdb7   : >> { %v2153_v15 = vmul.f32 %v2147_v3, %v2133_v60  ;;  %v2146_v18 = vmul.f32 0.044715, %v2128_v11  ;;  %v2156_v19 = vmul.f32 %v2150_v63, %v2118_v48  ;;  %v2163_v21 = vadd.f32 %v2157_v14, %v2123_v30  ;;  %v566_v3 = vld [vmem:[%s3554_s12 + $0x8] sm:$0xf] }
 0xdb8   : >> { %v2166_v34 = vmul.f32 0.7978846, %v2160_v29  ;;  %v2140_v36 = vmul.f32 0.5, %v2128_v11  ;;  %v2136_v63 = vmul.f32 0.5, %v3560_v50 }
 0xdb9   : >> { %v2152_v17 = vmul.f32 %v2146_v18, %v2128_v11  ;;  %v2159_v16 = vmul.f32 %v2153_v15, %v2133_v60  ;;  %v2162_v22 = vadd.f32 %v2156_v19, %v2118_v48  ;;  %v2169_v24 = vmul.f32 0.7978846, %v2163_v21  ;;  %v2198_v48 = vpop.permute.xlu0 %2197  ;;  %v2193_v15 = vpop.permute.xlu1 %2192 }
 0xdbb   : >> { %v2165_v25 = vadd.f32 %v2159_v16, %v2133_v60  ;;  %v2158_v26 = vmul.f32 %v2152_v17, %v2128_v11  ;;  %v2168_v55 = vmul.f32 0.7978846, %v2162_v22  ;;  %3030 = vtanh.f32 %v2169_v24 }
 0xdbc   : >> { %v2137_v60 = vmul.f32 0.5, %v3558_v45 }
 0xdbd   : >> { %v2171_v28 = vmul.f32 0.7978846, %v2165_v25  ;;  %v2164_v54 = vadd.f32 %v2158_v26, %v2128_v11 }
 0xdbf   : >> { %3032 = vtanh.f32 %v2171_v28  ;;  %v2170_v32 = vmul.f32 0.7978846, %v2164_v54 }
 0xdc0   : >> { %3034 = vtanh.f32 %v2168_v55 }
 0xdc1   : >> { %3036 = vtanh.f32 %v2170_v32 }
 0xdc2   : >> { %3038 = vtanh.f32 %v2167_v33 }
 0xdc3   : >> { %3040 = vtanh.f32 %v2166_v34 }
 0xdc8   : >> { %v3031_v35 = vpop.eup %3030 }
 0xdc9   : >> { %v2181_v49 = vadd.f32 1.0, %v3031_v35  ;;  %v2334_v35 = vpop.permute.xlu1 (%p543_p11), %2333 }
 0xdcb   : >> { %v2187_v56 = vmul.f32 %v2181_v49, %v2139_v31 }
 0xdcc   : >> { %v3033_v37 = vpop.eup %3032 }
 0xdcd   : >> { %v3035_v38 = vpop.eup %3034  ;;  %v2183_v40 = vadd.f32 1.0, %v3033_v37  ;;  %v2322_v37 = vpop.permute.xlu0 (%p543_p11), %2321 }
 0xdce   : >> { %v3037_v41 = vpop.eup %3036  ;;  %v2180_v52 = vadd.f32 1.0, %v3035_v38 }
 0xdcf   : >> { %v2189_v43 = vmul.f32 %v2183_v40, %v2141_v39  ;;  %v2182_v47 = vadd.f32 1.0, %v3037_v41  ;;  %v3039_v46 = vpop.eup %3038 }
 0xdd0   : >> { %v3041_v53 = vpop.eup %3040  ;;  %v2179_v58 = vadd.f32 1.0, %v3039_v46  ;;  %v2186_v59 = vmul.f32 %v2180_v52, %v2138_v57 }
 0xdd1   : >> { %2902 = vmatprep.subr.mxu1 %v2189_v43  ;;  %v2188_v51 = vmul.f32 %v2182_v47, %v2140_v36  ;;  %v2178_v61 = vadd.f32 1.0, %v3041_v53  ;;  %v2317_v41 = vpop.permute.xlu0 (%p543_p11), %2316  ;;  %v2329_v36 = vpop.permute.xlu1 (%p543_p11), %2328 }
 0xdd2   : >> { %2903 = vmatpush3.msra.mxu1 %v2189_v43  ;;  %v2185_v62 = vmul.f32 %v2179_v58, %v2137_v60 }
 0xdd3   : >> { %2904 = vmatprep.subr.mxu1 %v2188_v51  ;;  %v2184_v30 = vmul.f32 %v2178_v61, %v2136_v63 }
 0xdd4   : >> { %2905 = vmatpush3.msra.mxu1 %v2188_v51 }
 0xdd5   : >> { %2906 = vmatprep.subr.mxu1 %v2187_v56  ;;  %v2341_v49 = vpop.permute.xlu0 (%p543_p11), %2340  ;;  %v2424_v53 = vpop.permute.xlu1 (%p543_p11), %2423 }
 0xdd6   : >> { %2907 = vmatpush3.msra.mxu1 %v2187_v56 }
 0xdd7   : >> { %2908 = vmatprep.subr.mxu1 %v2186_v59 }
 0xdd8   : >> { %2909 = vmatpush3.msra.mxu1 %v2186_v59 }
 0xdd9   : >> { %2910 = vmatprep.subr.mxu1 %v2185_v62 }
 0xdda   : >> { %2911 = vmatpush3.msra.mxu1 %v2185_v62 }
 0xddb   : >> { %2912 = vmatprep.subr.mxu1 %v2184_v30 }
 0xddc   : >> { %2913 = vmatpush3.msra.mxu1 %v2184_v30 }
 0xddd   : >> { %2915 = vmatmul.mubr.msk.f32.vlgmr.msra.gmra.mxu1 %vm2200_vm15, %v566_v3  ;;  %2924 = vmatprep.subr.mxu1 (%p543_p11), %v3132_v7 }
 0xdde   : > { %2926 = vmatprep.mubr.msk.f32.mxu1 (%p543_p11), %vm3133_vm3, %v3132_v7 }
 0xe9d   : >> { %v2916_v11 = vpop.f32.mrf.mxu1 }
 0xe9e   : >> { %v2279_v14 = vadd.f32 %v2916_v11, %v2198_v48 }
 0xe9f   : >> { %v2273_v45 = vpop.f32.mrf.mxu1 }
 0xea0   : >> { %v2283_v18 = vadd.f32 %v2279_v14, %v3523_v42   ;;  %v2274_v19 = vadd.f32 %v2273_v45, %v2193_v15  ;;  %545 = sbr.rel (!%p543_p11) target bundleno = 630 (0x276), region = 89 }
 0xea2   : >> { %v2282_v20 = vadd.f32 %v2274_v19, %v3527_v44   ;;  %v3666_v46 = vmov %v2283_v18  ;;  %v2286_v12 = vsel (%p543_p11), %vm590_vm11, %v2283_v18, 0.0 }
 0xea4   : >> { %v3667_v48 = vmov %v2282_v20  ;;  %v2284_v9 = vsel (%p543_p11), %vm457_vm9, %v2282_v20, 0.0 }
 0xea5   : > { %v2287_v13 = vadd.f32 %v2286_v12, %v2284_v9 }
 0xea7   : > { %v2288_v42 = vrot.slane %v2287_v13, 4 }
 0xea9   : > { %v2289_v44 = vadd.f32 %v2288_v42, %v2287_v13 }
 0xeab   : > { %v2290_v50 = vrot.slane %v2289_v44, 2 }
 0xead   : > { %v2291_v21 = vadd.f32 %v2290_v50, %v2289_v44 }
 0xeaf   : > { %v2292_v17 = vrot.slane %v2291_v21, 1 }
 0xeb1   : > { %v2293_v16 = vadd.f32 %v2292_v17, %v2291_v21 }
 0xeb3   : > { %v2295_v10 = vmul.f32 0.083333336, %v2293_v16 }
 0xeb5   : > { %v2296_v22 = vsub.f32 %v2282_v20, %v2295_v10  ;;  %v2297_v8 = vsub.f32 %v2283_v18, %v2295_v10 }
 0xeb7   : > { %v2298_v23 = vmul.f32 %v2296_v22, %v2296_v22  ;;  %v2299_v5 = vmul.f32 %v2297_v8, %v2297_v8 }
 0xeb9   : > { %v2300_v4 = vsel %vm457_vm9, %v2298_v23, 0.0  ;;  %v2301_v6 = vsel %vm590_vm11, %v2299_v5, 0.0 }
 0xeba   : > { %v2302_v24 = vadd.f32 %v2301_v6, %v2300_v4 }
 0xebc   : > { %v2303_v25 = vrot.slane %v2302_v24, 4 }
 0xebe   : > { %v2304_v26 = vadd.f32 %v2303_v25, %v2302_v24 }
 0xec0   : > { %v2305_v27 = vrot.slane %v2304_v26, 2 }
 0xec2   : > { %v2306_v55 = vadd.f32 %v2305_v27, %v2304_v26 }
 0xec4   : > { %v2307_v28 = vrot.slane %v2306_v55, 1 }
 0xec6   : > { %v2308_v54 = vadd.f32 %v2307_v28, %v2306_v55 }
 0xec8   : > { %v2309_v29 = vmul.f32 0.083333336, %v2308_v54 }
 0xeca   : > { %v2310_v32 = vadd.f32 1e-06, %v2309_v29 }
 0xecc   : > { %3044 = vrsqrt.f32 %v2310_v32 }
 0xed9   : > { %v3045_v33 = vpop.eup %3044 }
 0xeda   : > { %v2313_v34 = vmul.f32 %v3045_v33, %v2297_v8  ;;  %v2312_v39 = vmul.f32 %v3045_v33, %v2296_v22 }
 0xedc   : > { %v2325_v38 = vmul.f32 %v2322_v37, %v2313_v34  ;;  %v2324_v43 = vmul.f32 %v2317_v41, %v2312_v39 }
 0xede   : > { %v2337_v40 = vadd.f32 %v2334_v35, %v2325_v38  ;;  %v2336_v47 = vadd.f32 %v2329_v36, %v2324_v43 }
 0xee0   : > { %2918 = vmatpush3.msk.msra.mxu0 %vm372_vm7, %v2337_v40 }
 0xee1   : > { %2919 = vmatprep.subr.mxu0 %v3132_v7 }
 0xee2   : > { %2920 = vmatpush3.msra.mxu0 %v2336_v47 }
 0xee3   : > { %2922 = vmatmul.mubr.msk.f32.vlgmr.msra.gmra.mxu0 %vm667_vm12, %v3229_v0 }
 0xfa3   : > { %v2416_v46 = vpop.f32.mrf.mxu0 }
 0xfa4   : > { %v2417_v51 = vadd.f32 %v2416_v46, %v2341_v49 }
 0xfa5   : > { %v2923_v31 = vpop.f32.mrf.mxu0 }
 0xfa6   : > { %v2420_v52 = vmax.f32 %v2417_v51, 0.0 }
 0xfa8   : > { %2925 = vmatpush3.msra.mxu1 %v2420_v52 }
 0xfa9   : > { %2927 = vmatmul.mubr.msk.f32.vlgmr.msra.gmra.mxu1 %vm457_vm9, %v3234_v1  ;;  %2929 = vmatprep.subr.mxu1 %v3132_v7  ;;  %v2503_v1 = vpop.permute.xlu0 %2502 }
 0xfaa   : > { %2931 = vmatprep.mubr.msk.f32.mxu1 %vm3133_vm3, %v3132_v7 }
0x1069   : > { %v2495_v56 = vpop.f32.mrf.mxu1 }
0x106a   : > { %v2496_v0 = vadd.f32 %v2495_v56, %v2424_v53 }
0x106b   : > { %v2928_v57 = vpop.f32.mrf.mxu1 }
0x106c   : > { %v2499_v58 = vmax.f32 %v2496_v0, 0.0 }
0x106e   : > { %2930 = vmatpush3.msk.msra.mxu1 %vm372_vm7, %v2499_v58 }
0x106f   : > { %2932 = vmatmul.mubr.msk.f32.vlgmr.msra.gmra.mxu1 %vm368_vm8, %v3239_v2 }
0x112f   : > { %v2577_v59 = vpop.f32.mrf.mxu1 }
0x1130   : > { %v2578_v60 = vadd.f32 %v2577_v59, %v2503_v1 }
0x1131   : > { %v2933_v7 = vpop.f32.mrf.mxu1 }
0x1132   : > { %2582 = vst.msk [vmem:[%s3324_s28] sm:$0x1] %vm2581_vm0, %v2578_v60 }
0x1133   : > { %3059 = shalt.err (!%p3056_p4)
}
0x1134   : > { %s3060_s28 = scalar_lea.hbm %s3619_s16, 16  ;;  %s3064_s10 = scalar_lea.hbm %s3663_s6, 32 }
0x1135   : > { %p3061_p7 = scmp.ne.s32.totalorder %s3619_s16, %s3060_s28  ;;  %p3065_p10 = scmp.lt.s32.totalorder %s3619_s16, %s3663_s6 }
0x1136   : > { %p3066_p11 = scmp.lt.s32.totalorder %s3064_s10, %s3060_s28 }
0x1137   : > { %p3062_p8 = pnand %p3061_p7, %p3215_p5 }
0x1138   : > { %p3067_p12 = por %p3066_p11, %p3065_p10 }
0x1139   : > { %p3063_p9 = pneg %p3062_p8 }
0x113b   : > { %p3068_p13 = pnand %p3067_p12, %p3063_p9 }
0x113d   : > { %3071 = shalt.err (!%p3068_p13)
}
0x113e   : > { %2934 = dma.vmem_to_hbm [thread:$0]  (%p3215_p5), %s2597_s13, 16, %s3619_s16, %s2584_s17  }
0x113f PF: > { %p2940_p0 = scmp.ge.s32.totalorder %s3118_s24, 2  ;;  %s2608_s29 = sand.u32 1, %s3106_s21  }
0x1140   : > { %s2609_s14 = scalar_lea.sflag [#allocation3], %s2608_s29 }
0x1141   : > { %p2937_p1 = pnand %p2940_p0, %p3219_p6 }
0x1143   : > { %p2938_p2 = pneg %p2937_p1 }
0x1145   : > { %3101 = dma.done.wait (%p2938_p2), %s2609_s14, 16  }
0x1146   : > { %3103 = vsyncadd (%p2938_p2), %s2609_s14, 4294967280  ;;  %p16_p3 = scmp.ge.s32.totalorder %s3202_s27, 4   ;;  %s3668_s21 = smov %s3110_s22 }
0x1147   : > { %s3669_s22 = smov %s3114_s23  ;;  %s3670_s23 = smov %s3213_s30 }
0x1148   : > { %s3671_s24 = smov %s3202_s27  ;;  %18 = sbr.rel (!%p16_p3) target bundleno = 3 (0x3), region = 100 }
0x114d   :  { %2613 = vsyncpa [#allocation3], 1 }
0x114e   :  { %2615 = vsyncpa [#allocation3 + $0x1], 1 }

</bundles_post_ra>
